<compile_context>
chip_gen: v5e
topology: v5e:2x2
jax: 0.10.0
libtpu: 0.0.40
codegen_flags: <defaults>
</compile_context>

<pallas_src>
import functools

import jax
import jax.numpy as jnp
from jax import lax
from jax.experimental import pallas as pl
from jax.experimental.pallas import tpu as pltpu

NEG_SLOPE = 0.01   # F.leaky_relu default
LN_EPS = 1e-5      # nn.LayerNorm default


def _leaky(x):
    # max(x, a*x) == leaky_relu(x) for 0 < a < 1; drops the compare of where().
    return jnp.maximum(x, jnp.asarray(NEG_SLOPE, x.dtype) * x)


def _default_flags(d_act):
    """Pick the static precision / action-path policy from the device kind."""
    try:
        kind = jax.devices()[0].device_kind.lower()
    except Exception:  # pragma: no cover - defensive
        kind = ""
    is_v6_or_newer = ("v6" in kind) or ("v7" in kind)
    ew_dtype = jnp.bfloat16 if is_v6_or_newer else jnp.float32
    # On v5e the MXU binds; a K=d_act matmul costs nearly a full MXU pass, so
    # move it to the VPU (rank-1 updates) when d_act is small.
    action_on_vpu = (not is_v6_or_newer) and ("v5" in kind) and (d_act <= 16)
    return ew_dtype, action_on_vpu


def fcqv_kernel(x_ref, u_ref,
                w0_ref, b0_ref, g_ref, be_ref,
                w1x_ref, w1u_ref, b1_ref,
                w2_ref, b2_ref,
                w3_ref, b3_ref,
                wo_ref,
                out_ref,
                *, ew_dtype, action_on_vpu):
    f32 = jnp.float32
    bf16 = jnp.bfloat16

    x = x_ref[...]                       # (bt, d_in)  f32
    u = u_ref[...]                       # (bt, d_act) f32

    # ---- input layer + LayerNorm + leaky_relu (stats in f32) ---------------
    h = jnp.dot(x.astype(bf16), w0_ref[...], preferred_element_type=f32)
    h = h + b0_ref[...]
    # Single-pass statistics (var = E[x^2] - mean^2), clamped: padded all-zero
    # rows give var=0 and stay finite through rsqrt(var + eps).
    mean = jnp.mean(h, axis=-1, keepdims=True)
    msq = jnp.mean(h * h, axis=-1, keepdims=True)
    var = jnp.maximum(msq - mean * mean, 0.0)
    h = (h - mean) * lax.rsqrt(var + LN_EPS)
    h = _leaky(h * g_ref[...] + be_ref[...]).astype(ew_dtype)

    # ---- hidden layer 0: concat(h, u) @ W1 == h @ W1x + u @ W1u ------------
    acc = jnp.dot(h.astype(bf16), w1x_ref[...], preferred_element_type=f32)
    if action_on_vpu:
        # v5e path: unrolled rank-1 updates on the VPU instead of a second
        # (near full-cost) K=d_act MXU pass.
        d_act = u_ref.shape[1]
        for k in range(d_act):
            acc = acc + u[:, k:k + 1] * w1u_ref[pl.ds(k, 1), :].astype(f32)
    else:
        acc = acc + jnp.dot(u.astype(bf16), w1u_ref[...],
                            preferred_element_type=f32)
    h = _leaky(acc.astype(ew_dtype) + b1_ref[...].astype(ew_dtype))

    # ---- hidden layer 1 -----------------------------------------------------
    acc = jnp.dot(h.astype(bf16), w2_ref[...], preferred_element_type=f32)
    h = _leaky(acc.astype(ew_dtype) + b2_ref[...].astype(ew_dtype))

    # ---- hidden layer 2 -----------------------------------------------------
    acc = jnp.dot(h.astype(bf16), w3_ref[...], preferred_element_type=f32)
    h = _leaky(acc.astype(ew_dtype) + b3_ref[...].astype(ew_dtype))

    # ---- output layer (N=1): (1,K) x (bt,K)^T -> lane-dense (1, bt) row -----
    q_row = lax.dot_general(wo_ref[...], h.astype(bf16),
                            dimension_numbers=(((1,), (1,)), ((), ())),
                            preferred_element_type=f32)        # (1, bt)
    out_ref[...] = q_row[None].astype(out_ref.dtype)           # (1, 1, bt)


def fcqv_forward(state, action, params, *, batch_tile=256,
                 ew_dtype=None, action_on_vpu=None):
    """state: (B, input_dim) f32, action: (B, output_dim) f32 -> (B, 1) f32."""
    B, d_in = state.shape
    _, d_act = action.shape
    (w0, b0, g, be, w1x, w1u, b1, w2, b2, w3, b3, wo_row, bo) = params
    h0, h1 = w0.shape[1], w1x.shape[1]
    h2, h3 = w2.shape[1], w3.shape[1]

    if ew_dtype is None or action_on_vpu is None:
        auto_ew, auto_vpu = _default_flags(d_act)
        ew_dtype = auto_ew if ew_dtype is None else ew_dtype
        action_on_vpu = auto_vpu if action_on_vpu is None else action_on_vpu

    # Adaptive batch tile: f32 sublane multiple for small B; big tile (sweep
    # 256/512 for large-B workloads) to amortize per-grid-step overhead.
    batch_tile = 8 * pl.cdiv(batch_tile, 8)
    bt = min(batch_tile, 8 * pl.cdiv(B, 8))
    num_tiles = pl.cdiv(B, bt)
    B_pad = num_tiles * bt
    if B_pad != B:
        pad = B_pad - B
        state = jnp.pad(state, ((0, pad), (0, 0)))
        action = jnp.pad(action, ((0, pad), (0, 0)))

    kernel = functools.partial(fcqv_kernel, ew_dtype=ew_dtype,
                               action_on_vpu=action_on_vpu)

    def batch_spec(shape):
        return pl.BlockSpec(shape, lambda i: (i, 0))

    def full_spec(shape):
        return pl.BlockSpec(shape, lambda i: (0, 0))

    rows = pl.pallas_call(
        kernel,
        out_shape=jax.ShapeDtypeStruct((num_tiles, 1, bt), jnp.float32),
        grid_spec=pltpu.PrefetchScalarGridSpec(
            num_scalar_prefetch=0,
            grid=(num_tiles,),
            in_specs=[
                batch_spec((bt, d_in)),    # state tile (f32)
                batch_spec((bt, d_act)),   # action tile (f32)
                full_spec((d_in, h0)),     # W0 (bf16)
                full_spec((1, h0)),        # b0 (f32)
                full_spec((1, h0)),        # LN gamma (f32)
                full_spec((1, h0)),        # LN beta (f32)
                full_spec((h0, h1)),       # W1 state-path rows (bf16)
                full_spec((d_act, h1)),    # W1 action-path rows (bf16)
                full_spec((1, h1)),        # b1 (f32)
                full_spec((h1, h2)),       # W2 (bf16)
                full_spec((1, h2)),        # b2 (f32)
                full_spec((h2, h3)),       # W3 (bf16)
                full_spec((1, h3)),        # b3 (f32)
                full_spec((1, h3)),        # Wout row (bf16, MXU trans-B)
            ],
            out_specs=pl.BlockSpec((1, 1, bt), lambda i: (i, 0, 0)),
        ),
        compiler_params=pltpu.CompilerParams(
            dimension_semantics=("parallel",)),
    )(state, action, w0, b0, g, be, w1x, w1u, b1, w2, b2, w3, b3, wo_row)

    # Output bias (one scalar) added here: keeps the kernel's vector path clean
    # and avoids an (8,128)-padded VMEM tile for a single value.
    return rows.reshape(B_pad, 1)[:B] + bo


def init_params(key, input_dim, output_dim, hidden_dims=(512, 512, 256, 128)):
    """Deterministic synthetic parameters; matmul weights stored as bf16 (in, out)."""
    ks = jax.random.split(key, 16)
    h0, h1, h2, h3 = hidden_dims

    def w(k, i, o):
        return (jax.random.normal(k, (i, o), jnp.float32) * 0.05).astype(jnp.bfloat16)

    def b(k, o):
        return (jax.random.normal(k, (1, o), jnp.float32) * 0.01).astype(jnp.float32)

    w0 = w(ks[0], input_dim, h0); b0 = b(ks[1], h0)
    g = jnp.ones((1, h0), jnp.float32); be = jnp.zeros((1, h0), jnp.float32)
    # first hidden layer input is concat(h0, action) -> split weight rows
    w1x = w(ks[2], h0, h1); w1u = w(ks[3], output_dim, h1); b1 = b(ks[4], h1)
    w2 = w(ks[5], h1, h2); b2 = b(ks[6], h2)
    w3 = w(ks[7], h2, h3); b3 = b(ks[8], h3)
    wo_row = (jax.random.normal(ks[9], (1, h3), jnp.float32) * 0.05).astype(jnp.bfloat16)
    bo = (jax.random.normal(ks[10], (1, 1), jnp.float32) * 0.01).astype(jnp.float32)
    return (w0, b0, g, be, w1x, w1u, b1, w2, b2, w3, b3, wo_row, bo)


def fcqv_reference(state, action, params, *, ew_dtype=jnp.float32):
    """Pure-JAX reference mirroring the kernel's precision policy."""
    (w0, b0, g, be, w1x, w1u, b1, w2, b2, w3, b3, wo_row, bo) = params

    def dot(a, wt):
        return jnp.dot(a.astype(jnp.bfloat16), wt.astype(jnp.bfloat16),
                       preferred_element_type=jnp.float32)

    h = dot(state, w0) + b0
    mean = jnp.mean(h, axis=-1, keepdims=True)
    var = jnp.mean((h - mean) ** 2, axis=-1, keepdims=True)
    h = (h - mean) / jnp.sqrt(var + LN_EPS) * g + be
    h = _leaky(h).astype(ew_dtype)
    a1 = dot(h, w1x) + dot(action, w1u)
    h = _leaky(a1.astype(ew_dtype) + b1.astype(ew_dtype))
    h = _leaky(dot(h, w2).astype(ew_dtype) + b2.astype(ew_dtype))
    h = _leaky(dot(h, w3).astype(ew_dtype) + b3.astype(ew_dtype))
    q = jnp.sum(h.astype(jnp.float32) * wo_row.astype(jnp.float32),
                axis=-1, keepdims=True)
    return q + bo


if __name__ == "__main__":
    key = jax.random.PRNGKey(0)
    k_state, k_action, k_params = jax.random.split(key, 3)

    B, input_dim, output_dim = 8, 32, 8
    state = jax.random.normal(k_state, (B, input_dim), jnp.float32)
    action = jax.random.normal(k_action, (B, output_dim), jnp.float32)
    params = init_params(k_params, input_dim, output_dim)

    ew_dtype, action_on_vpu = _default_flags(output_dim)
    out = fcqv_forward(state, action, params,
                       ew_dtype=ew_dtype, action_on_vpu=action_on_vpu)
    out = jax.block_until_ready(out)

    ref = fcqv_reference(state, action, params, ew_dtype=ew_dtype)
    assert out.shape == (B, 1)
    max_err = float(jnp.max(jnp.abs(out - ref)))
    assert jnp.allclose(out, ref, atol=1e-2, rtol=1e-2), (max_err, out, ref)

    print("KERNEL_OK")
</pallas_src>

<mosaic_0001>
module attributes {stable_mosaic.version = 11 : i64} {
  func.func @fcqv_kernel(%arg0: i32, %arg1: memref<8x32xf32, #tpu.memory_space<vmem>>, %arg2: memref<8x8xf32, #tpu.memory_space<vmem>>, %arg3: memref<32x512xbf16, #tpu.memory_space<vmem>>, %arg4: memref<1x512xf32, #tpu.memory_space<vmem>>, %arg5: memref<1x512xf32, #tpu.memory_space<vmem>>, %arg6: memref<1x512xf32, #tpu.memory_space<vmem>>, %arg7: memref<512x512xbf16, #tpu.memory_space<vmem>>, %arg8: memref<8x512xbf16, #tpu.memory_space<vmem>>, %arg9: memref<1x512xf32, #tpu.memory_space<vmem>>, %arg10: memref<512x256xbf16, #tpu.memory_space<vmem>>, %arg11: memref<1x256xf32, #tpu.memory_space<vmem>>, %arg12: memref<256x128xbf16, #tpu.memory_space<vmem>>, %arg13: memref<1x128xf32, #tpu.memory_space<vmem>>, %arg14: memref<1x128xbf16, #tpu.memory_space<vmem>>, %arg15: memref<1x1x8xf32, #tpu.memory_space<vmem>>) attributes {dimension_semantics = [#tpu.dimension_semantics<parallel>], iteration_bounds = array<i64: 1>, scalar_prefetch = 0 : i64, scratch_operands = 0 : i64, tpu.core_type = #tpu.core_type<tc>, window_params = [{transform_indices = @transform_0, window_bounds = array<i64: 8, 32>}, {transform_indices = @transform_1, window_bounds = array<i64: 8, 8>}, {pipeline_mode = #tpu.pipeline_mode<synchronous>, transform_indices = @transform_2, window_bounds = array<i64: 32, 512>}, {pipeline_mode = #tpu.pipeline_mode<synchronous>, transform_indices = @transform_3, window_bounds = array<i64: 1, 512>}, {pipeline_mode = #tpu.pipeline_mode<synchronous>, transform_indices = @transform_4, window_bounds = array<i64: 1, 512>}, {pipeline_mode = #tpu.pipeline_mode<synchronous>, transform_indices = @transform_5, window_bounds = array<i64: 1, 512>}, {pipeline_mode = #tpu.pipeline_mode<synchronous>, transform_indices = @transform_6, window_bounds = array<i64: 512, 512>}, {pipeline_mode = #tpu.pipeline_mode<synchronous>, transform_indices = @transform_7, window_bounds = array<i64: 8, 512>}, {pipeline_mode = #tpu.pipeline_mode<synchronous>, transform_indices = @transform_8, window_bounds = array<i64: 1, 512>}, {pipeline_mode = #tpu.pipeline_mode<synchronous>, transform_indices = @transform_9, window_bounds = array<i64: 512, 256>}, {pipeline_mode = #tpu.pipeline_mode<synchronous>, transform_indices = @transform_10, window_bounds = array<i64: 1, 256>}, {pipeline_mode = #tpu.pipeline_mode<synchronous>, transform_indices = @transform_11, window_bounds = array<i64: 256, 128>}, {pipeline_mode = #tpu.pipeline_mode<synchronous>, transform_indices = @transform_12, window_bounds = array<i64: 1, 128>}, {pipeline_mode = #tpu.pipeline_mode<synchronous>, transform_indices = @transform_13, window_bounds = array<i64: 1, 128>}, {transform_indices = @transform_14, window_bounds = array<i64: 1, 1, 8>}]} {
    %c0 = arith.constant 0 : index
    %c0_0 = arith.constant 0 : index
    %0 = vector.load %arg1[%c0, %c0_0] : memref<8x32xf32, #tpu.memory_space<vmem>>, vector<8x32xf32>
    %c0_1 = arith.constant 0 : index
    %c0_2 = arith.constant 0 : index
    %1 = vector.load %arg2[%c0_1, %c0_2] : memref<8x8xf32, #tpu.memory_space<vmem>>, vector<8x8xf32>
    %2 = arith.truncf %0 : vector<8x32xf32> to vector<8x32xbf16>
    %c0_3 = arith.constant 0 : index
    %c0_4 = arith.constant 0 : index
    %3 = vector.load %arg3[%c0_3, %c0_4] : memref<32x512xbf16, #tpu.memory_space<vmem>>, vector<32x512xbf16>
    %cst = arith.constant dense<0.000000e+00> : vector<8x512xf32>
    %4 = tpu.matmul %2, %3, %cst {dimension_numbers = #tpu.dot_dimension_numbers<[1], [0], [0], [1], [0, 0, 1, 1], [], []>} : vector<8x32xbf16>, vector<32x512xbf16>, vector<8x512xf32> -> vector<8x512xf32>
    %c0_5 = arith.constant 0 : index
    %c0_6 = arith.constant 0 : index
    %5 = vector.load %arg4[%c0_5, %c0_6] : memref<1x512xf32, #tpu.memory_space<vmem>>, vector<1x512xf32>
    %6 = vector.broadcast %5 : vector<1x512xf32> to vector<8x512xf32>
    %7 = arith.addf %4, %6 : vector<8x512xf32>
    %cst_7 = arith.constant dense<0.000000e+00> : vector<8xf32>
    %8 = vector.multi_reduction <add>, %7, %cst_7 [1] : vector<8x512xf32> to vector<8xf32>
    %9 = vector.shape_cast %8 : vector<8xf32> to vector<8x1xf32>
    %cst_8 = arith.constant 5.120000e+02 : f32
    %10 = vector.broadcast %cst_8 : f32 to vector<8x1xf32>
    %11 = arith.divf %9, %10 : vector<8x1xf32>
    %12 = arith.mulf %7, %7 : vector<8x512xf32>
    %cst_9 = arith.constant dense<0.000000e+00> : vector<8xf32>
    %13 = vector.multi_reduction <add>, %12, %cst_9 [1] : vector<8x512xf32> to vector<8xf32>
    %14 = vector.shape_cast %13 : vector<8xf32> to vector<8x1xf32>
    %cst_10 = arith.constant 5.120000e+02 : f32
    %15 = vector.broadcast %cst_10 : f32 to vector<8x1xf32>
    %16 = arith.divf %14, %15 : vector<8x1xf32>
    %17 = arith.mulf %11, %11 : vector<8x1xf32>
    %18 = arith.subf %16, %17 : vector<8x1xf32>
    %cst_11 = arith.constant 0.000000e+00 : f32
    %19 = vector.broadcast %cst_11 : f32 to vector<8x1xf32>
    %20 = arith.maximumf %18, %19 : vector<8x1xf32>
    %21 = vector.broadcast %11 : vector<8x1xf32> to vector<8x512xf32>
    %22 = arith.subf %7, %21 : vector<8x512xf32>
    %cst_12 = arith.constant 9.99999974E-6 : f32
    %23 = vector.broadcast %cst_12 : f32 to vector<8x1xf32>
    %24 = arith.addf %20, %23 : vector<8x1xf32>
    %25 = math.rsqrt %24 : vector<8x1xf32>
    %26 = vector.broadcast %25 : vector<8x1xf32> to vector<8x512xf32>
    %27 = arith.mulf %22, %26 : vector<8x512xf32>
    %c0_13 = arith.constant 0 : index
    %c0_14 = arith.constant 0 : index
    %28 = vector.load %arg5[%c0_13, %c0_14] : memref<1x512xf32, #tpu.memory_space<vmem>>, vector<1x512xf32>
    %29 = vector.broadcast %28 : vector<1x512xf32> to vector<8x512xf32>
    %30 = arith.mulf %27, %29 : vector<8x512xf32>
    %c0_15 = arith.constant 0 : index
    %c0_16 = arith.constant 0 : index
    %31 = vector.load %arg6[%c0_15, %c0_16] : memref<1x512xf32, #tpu.memory_space<vmem>>, vector<1x512xf32>
    %32 = vector.broadcast %31 : vector<1x512xf32> to vector<8x512xf32>
    %33 = arith.addf %30, %32 : vector<8x512xf32>
    %cst_17 = arith.constant 0.00999999977 : f32
    %34 = vector.broadcast %cst_17 : f32 to vector<8x512xf32>
    %35 = arith.mulf %34, %33 : vector<8x512xf32>
    %36 = arith.maximumf %33, %35 : vector<8x512xf32>
    %37 = arith.truncf %36 : vector<8x512xf32> to vector<8x512xbf16>
    %c0_18 = arith.constant 0 : index
    %c0_19 = arith.constant 0 : index
    %38 = vector.load %arg7[%c0_18, %c0_19] : memref<512x512xbf16, #tpu.memory_space<vmem>>, vector<512x512xbf16>
    %cst_20 = arith.constant dense<0.000000e+00> : vector<8x512xf32>
    %39 = tpu.matmul %37, %38, %cst_20 {dimension_numbers = #tpu.dot_dimension_numbers<[1], [0], [0], [1], [0, 0, 1, 1], [], []>} : vector<8x512xbf16>, vector<512x512xbf16>, vector<8x512xf32> -> vector<8x512xf32>
    %40 = arith.truncf %1 : vector<8x8xf32> to vector<8x8xbf16>
    %c0_21 = arith.constant 0 : index
    %c0_22 = arith.constant 0 : index
    %41 = vector.load %arg8[%c0_21, %c0_22] : memref<8x512xbf16, #tpu.memory_space<vmem>>, vector<8x512xbf16>
    %cst_23 = arith.constant dense<0.000000e+00> : vector<8x512xf32>
    %42 = tpu.matmul %40, %41, %cst_23 {dimension_numbers = #tpu.dot_dimension_numbers<[1], [0], [0], [1], [0, 0, 1, 1], [], []>} : vector<8x8xbf16>, vector<8x512xbf16>, vector<8x512xf32> -> vector<8x512xf32>
    %43 = arith.addf %39, %42 : vector<8x512xf32>
    %c0_24 = arith.constant 0 : index
    %c0_25 = arith.constant 0 : index
    %44 = vector.load %arg9[%c0_24, %c0_25] : memref<1x512xf32, #tpu.memory_space<vmem>>, vector<1x512xf32>
    %45 = vector.broadcast %44 : vector<1x512xf32> to vector<8x512xf32>
    %46 = arith.addf %43, %45 : vector<8x512xf32>
    %cst_26 = arith.constant 0.00999999977 : f32
    %47 = vector.broadcast %cst_26 : f32 to vector<8x512xf32>
    %48 = arith.mulf %47, %46 : vector<8x512xf32>
    %49 = arith.maximumf %46, %48 : vector<8x512xf32>
    %50 = arith.truncf %49 : vector<8x512xf32> to vector<8x512xbf16>
    %c0_27 = arith.constant 0 : index
    %c0_28 = arith.constant 0 : index
    %51 = vector.load %arg10[%c0_27, %c0_28] : memref<512x256xbf16, #tpu.memory_space<vmem>>, vector<512x256xbf16>
    %cst_29 = arith.constant dense<0.000000e+00> : vector<8x256xf32>
    %52 = tpu.matmul %50, %51, %cst_29 {dimension_numbers = #tpu.dot_dimension_numbers<[1], [0], [0], [1], [0, 0, 1, 1], [], []>} : vector<8x512xbf16>, vector<512x256xbf16>, vector<8x256xf32> -> vector<8x256xf32>
    %c0_30 = arith.constant 0 : index
    %c0_31 = arith.constant 0 : index
    %53 = vector.load %arg11[%c0_30, %c0_31] : memref<1x256xf32, #tpu.memory_space<vmem>>, vector<1x256xf32>
    %54 = vector.broadcast %53 : vector<1x256xf32> to vector<8x256xf32>
    %55 = arith.addf %52, %54 : vector<8x256xf32>
    %cst_32 = arith.constant 0.00999999977 : f32
    %56 = vector.broadcast %cst_32 : f32 to vector<8x256xf32>
    %57 = arith.mulf %56, %55 : vector<8x256xf32>
    %58 = arith.maximumf %55, %57 : vector<8x256xf32>
    %59 = arith.truncf %58 : vector<8x256xf32> to vector<8x256xbf16>
    %c0_33 = arith.constant 0 : index
    %c0_34 = arith.constant 0 : index
    %60 = vector.load %arg12[%c0_33, %c0_34] : memref<256x128xbf16, #tpu.memory_space<vmem>>, vector<256x128xbf16>
    %cst_35 = arith.constant dense<0.000000e+00> : vector<8x128xf32>
    %61 = tpu.matmul %59, %60, %cst_35 {dimension_numbers = #tpu.dot_dimension_numbers<[1], [0], [0], [1], [0, 0, 1, 1], [], []>} : vector<8x256xbf16>, vector<256x128xbf16>, vector<8x128xf32> -> vector<8x128xf32>
    %c0_36 = arith.constant 0 : index
    %c0_37 = arith.constant 0 : index
    %62 = vector.load %arg13[%c0_36, %c0_37] : memref<1x128xf32, #tpu.memory_space<vmem>>, vector<1x128xf32>
    %63 = vector.broadcast %62 : vector<1x128xf32> to vector<8x128xf32>
    %64 = arith.addf %61, %63 : vector<8x128xf32>
    %cst_38 = arith.constant 0.00999999977 : f32
    %65 = vector.broadcast %cst_38 : f32 to vector<8x128xf32>
    %66 = arith.mulf %65, %64 : vector<8x128xf32>
    %67 = arith.maximumf %64, %66 : vector<8x128xf32>
    %c0_39 = arith.constant 0 : index
    %c0_40 = arith.constant 0 : index
    %68 = vector.load %arg14[%c0_39, %c0_40] : memref<1x128xbf16, #tpu.memory_space<vmem>>, vector<1x128xbf16>
    %69 = arith.truncf %67 : vector<8x128xf32> to vector<8x128xbf16>
    %cst_41 = arith.constant dense<0.000000e+00> : vector<1x8xf32>
    %70 = tpu.matmul %68, %69, %cst_41 {dimension_numbers = #tpu.dot_dimension_numbers<[1], [1], [0], [0], [0, 0, 1, 0], [], []>} : vector<1x128xbf16>, vector<8x128xbf16>, vector<1x8xf32> -> vector<1x8xf32>
    %71 = vector.shape_cast %70 : vector<1x8xf32> to vector<1x1x8xf32>
    %c0_42 = arith.constant 0 : index
    %c0_43 = arith.constant 0 : index
    %c0_44 = arith.constant 0 : index
    %72 = vector.load %arg15[%c0_42, %c0_43, %c0_44] : memref<1x1x8xf32, #tpu.memory_space<vmem>>, vector<1x1x8xf32>
    tpu.vector_store %arg15[%c0_42, %c0_43, %c0_44], %71 {strides = array<i32>} : memref<1x1x8xf32, #tpu.memory_space<vmem>>, vector<1x1x8xf32>,
    return
  }
  func.func @transform_0(%arg0: i32) -> (i32, i32) {
    %c0_i32 = arith.constant 0 : i32
    %c0_i32_0 = arith.constant 0 : i32
    return %arg0, %c0_i32 : i32, i32
  }
  func.func @transform_1(%arg0: i32) -> (i32, i32) {
    %c0_i32 = arith.constant 0 : i32
    %c0_i32_0 = arith.constant 0 : i32
    return %arg0, %c0_i32 : i32, i32
  }
  func.func @transform_2(%arg0: i32) -> (i32, i32) {
    %c0_i32 = arith.constant 0 : i32
    %c0_i32_0 = arith.constant 0 : i32
    %c0_i32_1 = arith.constant 0 : i32
    return %c0_i32, %c0_i32_0 : i32, i32
  }
  func.func @transform_3(%arg0: i32) -> (i32, i32) {
    %c0_i32 = arith.constant 0 : i32
    %c0_i32_0 = arith.constant 0 : i32
    %c0_i32_1 = arith.constant 0 : i32
    return %c0_i32, %c0_i32_0 : i32, i32
  }
  func.func @transform_4(%arg0: i32) -> (i32, i32) {
    %c0_i32 = arith.constant 0 : i32
    %c0_i32_0 = arith.constant 0 : i32
    %c0_i32_1 = arith.constant 0 : i32
    return %c0_i32, %c0_i32_0 : i32, i32
  }
  func.func @transform_5(%arg0: i32) -> (i32, i32) {
    %c0_i32 = arith.constant 0 : i32
    %c0_i32_0 = arith.constant 0 : i32
    %c0_i32_1 = arith.constant 0 : i32
    return %c0_i32, %c0_i32_0 : i32, i32
  }
  func.func @transform_6(%arg0: i32) -> (i32, i32) {
    %c0_i32 = arith.constant 0 : i32
    %c0_i32_0 = arith.constant 0 : i32
    %c0_i32_1 = arith.constant 0 : i32
    return %c0_i32, %c0_i32_0 : i32, i32
  }
  func.func @transform_7(%arg0: i32) -> (i32, i32) {
    %c0_i32 = arith.constant 0 : i32
    %c0_i32_0 = arith.constant 0 : i32
    %c0_i32_1 = arith.constant 0 : i32
    return %c0_i32, %c0_i32_0 : i32, i32
  }
  func.func @transform_8(%arg0: i32) -> (i32, i32) {
    %c0_i32 = arith.constant 0 : i32
    %c0_i32_0 = arith.constant 0 : i32
    %c0_i32_1 = arith.constant 0 : i32
    return %c0_i32, %c0_i32_0 : i32, i32
  }
  func.func @transform_9(%arg0: i32) -> (i32, i32) {
    %c0_i32 = arith.constant 0 : i32
    %c0_i32_0 = arith.constant 0 : i32
    %c0_i32_1 = arith.constant 0 : i32
    return %c0_i32, %c0_i32_0 : i32, i32
  }
  func.func @transform_10(%arg0: i32) -> (i32, i32) {
    %c0_i32 = arith.constant 0 : i32
    %c0_i32_0 = arith.constant 0 : i32
    %c0_i32_1 = arith.constant 0 : i32
    return %c0_i32, %c0_i32_0 : i32, i32
  }
  func.func @transform_11(%arg0: i32) -> (i32, i32) {
    %c0_i32 = arith.constant 0 : i32
    %c0_i32_0 = arith.constant 0 : i32
    %c0_i32_1 = arith.constant 0 : i32
    return %c0_i32, %c0_i32_0 : i32, i32
  }
  func.func @transform_12(%arg0: i32) -> (i32, i32) {
    %c0_i32 = arith.constant 0 : i32
    %c0_i32_0 = arith.constant 0 : i32
    %c0_i32_1 = arith.constant 0 : i32
    return %c0_i32, %c0_i32_0 : i32, i32
  }
  func.func @transform_13(%arg0: i32) -> (i32, i32) {
    %c0_i32 = arith.constant 0 : i32
    %c0_i32_0 = arith.constant 0 : i32
    %c0_i32_1 = arith.constant 0 : i32
    return %c0_i32, %c0_i32_0 : i32, i32
  }
  func.func @transform_14(%arg0: i32) -> (i32, i32, i32) {
    %c0_i32 = arith.constant 0 : i32
    %c0_i32_0 = arith.constant 0 : i32
    %c0_i32_1 = arith.constant 0 : i32
    return %arg0, %c0_i32, %c0_i32_0 : i32, i32, i32
  }
}

</mosaic_0001>

<bundles_post_ra>
// kernel: tpu_custom_call.1
= control target key start
LH: loop header
LB: loop body
LE: loop exit
PB: predicated region body
PF: predicated region fallthrough
CT: control target
= control target key end

     0   :  { %19 = vsyncpa [#allocation3], 0  ;;  %s3814_s0 = inlined_call_operand.hbm [shape: f32[8,32], index: 0, kind: input, shape index: {}]   ;;  %s3815_s1 = inlined_call_operand.hbm [shape: f32[8,8], index: 1, kind: input, shape index: {}]   ;;  %s3816_s2 = inlined_call_operand.hbm [shape: bf16[32,512], index: 2, kind: input, shape index: {}]   ;;  %s3817_s3 = inlined_call_operand.hbm [shape: f32[1,512], index: 3, kind: input, shape index: {}]   ;;  %s3818_s4 = inlined_call_operand.hbm [shape: f32[1,512], index: 4, kind: input, shape index: {}]   ;;  %s3819_s5 = inlined_call_operand.vmem [shape: f32[1,512], index: 5, kind: input, shape index: {}]   ;;  %s3820_s6 = inlined_call_operand.hbm [shape: bf16[512,512], index: 6, kind: input, shape index: {}]   ;;  %s3821_s7 = inlined_call_operand.hbm [shape: bf16[8,512], index: 7, kind: input, shape index: {}]   ;;  %s3822_s8 = inlined_call_operand.hbm [shape: f32[1,512], index: 8, kind: input, shape index: {}]   ;;  %s3823_s9 = inlined_call_operand.hbm [shape: bf16[512,256], index: 9, kind: input, shape index: {}]   ;;  %s3824_s10 = inlined_call_operand.vmem [shape: f32[1,256], index: 10, kind: input, shape index: {}]   ;;  %s3825_s11 = inlined_call_operand.hbm [shape: bf16[256,128], index: 11, kind: input, shape index: {}]   ;;  %s3826_s12 = inlined_call_operand.vmem [shape: f32[1,128], index: 12, kind: input, shape index: {}]   ;;  %s3827_s13 = inlined_call_operand.vmem [shape: bf16[1,128], index: 13, kind: input, shape index: {}]   ;;  %s3828_s14 = inlined_call_operand.hbm [shape: f32[1,1,8], index: 14, kind: output, shape index: {}]  }
   0x1   :  { %20 = vsyncpa [#allocation6], 0 }
   0x2   :  { %21 = vsyncpa [#allocation9], 0 }
   0x3   :  { %22 = vsyncpa [#allocation12], 0 }
   0x4   :  { %23 = vsyncpa [#allocation15], 0 }
   0x5   :  { %24 = vsyncpa [#allocation18], 0  ;;  %s42_s15 = sshll.u32 %s3815_s1, 4  ;;  %s43_s15 = int_to_ptr.hbm [resolvable:$true] %s42_s15 }
   0x6   :  { %25 = vsyncpa [#allocation4], 0  ;;  %s3567_s16 = smov [#allocation5]   ;;  %s66_s20 = sshll.u32 %s3817_s3, 4  ;;  %s67_s20 = int_to_ptr.hbm [resolvable:$true] %s66_s20 }
   0x7   :  { %s44_s17 = sshll.u32 %s3567_s16, 4  ;;  %s3568_s21 = smov [#allocation8]   ;;  %s45_s17 = int_to_ptr.vmem [resolvable:$true] %s44_s17 }
   0x8   :  { %47 = dma.hbm_to_vmem [thread:$0]  %s43_s15, 128, %s45_s17, [#allocation6]  }
   0x9   :  { %s68_s22 = sshll.u32 %s3568_s21, 4  ;;  %s89_s25 = sshll.u32 %s3820_s6, 4  ;;  %s69_s22 = int_to_ptr.vmem [resolvable:$true] %s68_s22  ;;  %s90_s25 = int_to_ptr.hbm [resolvable:$true] %s89_s25 }
   0xa   :  { %71 = dma.hbm_to_vmem [thread:$0]  %s67_s20, 64, %s69_s22, [#allocation9]  }
   0xb   :  { %s3569_s1 = smov [#allocation11]   ;;  %s114_s29 = sshll.u32 %s3822_s8, 4  ;;  %s115_s29 = int_to_ptr.hbm [resolvable:$true] %s114_s29 }
   0xc   :  { %s91_s26 = sshll.u32 %s3569_s1, 4  ;;  %s3570_s30 = smov 256   ;;  %s92_s26 = int_to_ptr.vmem [resolvable:$true] %s91_s26 }
   0xd   :  { %s3571_s3 = smov 16   ;;  %s3572_s15 = smov [#allocation14]  }
   0xe   :  { %97 = dma.hbm_to_vmem [thread:$0]  %s90_s25, 16384, %s92_s26, [#allocation12], %s3570_s30, %s3570_s30, %s3571_s3  }
   0xf   :  { %s116_s16 = sshll.u32 %s3572_s15, 4  ;;  %s31_s19 = sshll.u32 %s3814_s0, 4  ;;  %s117_s16 = int_to_ptr.vmem [resolvable:$true] %s116_s16  ;;  %s32_s19 = int_to_ptr.hbm [resolvable:$true] %s31_s19 }
  0x10   :  { %119 = dma.hbm_to_vmem [thread:$0]  %s115_s29, 64, %s117_s16, [#allocation15]  }
  0x11   :  { %s52_s21 = sshll.u32 %s3816_s2, 4  ;;  %s3573_s22 = smov [#allocation2]   ;;  %s53_s21 = int_to_ptr.hbm [resolvable:$true] %s52_s21 }
  0x12   :  { %s33_s23 = sshll.u32 %s3573_s22, 4  ;;  %s3574_s8 = smov [#allocation7]   ;;  %s34_s23 = int_to_ptr.vmem [resolvable:$true] %s33_s23 }
  0x13   :  { %36 = dma.hbm_to_vmem [thread:$0]  %s32_s19, 128, %s34_s23, [#allocation3]  }
  0x14   :  { %s54_s24 = sshll.u32 %s3574_s8, 4  ;;  %s77_s26 = sshll.u32 %s3818_s4, 4  ;;  %s55_s24 = int_to_ptr.vmem [resolvable:$true] %s54_s24  ;;  %s78_s26 = int_to_ptr.hbm [resolvable:$true] %s77_s26 }
  0x15   :  { %60 = dma.hbm_to_vmem [thread:$0]  %s53_s21, 1024, %s55_s24, [#allocation6], %s3570_s30, %s3570_s30, %s3571_s3  }
  0x16   :  { %s103_s28 = sshll.u32 %s3821_s7, 4  ;;  %s3575_s29 = smov [#allocation10]   ;;  %s104_s28 = int_to_ptr.hbm [resolvable:$true] %s103_s28 }
  0x17   :  { %s79_s2 = sshll.u32 %s3575_s29, 4  ;;  %s3576_s15 = smov [#allocation13]   ;;  %s80_s2 = int_to_ptr.vmem [resolvable:$true] %s79_s2 }
  0x18   :  { %82 = dma.hbm_to_vmem [thread:$0]  %s78_s26, 64, %s80_s2, [#allocation9]  }
  0x19   :  { %s105_s16 = sshll.u32 %s3576_s15, 4  ;;  %s124_s19 = sshll.u32 %s3823_s9, 4  ;;  %s106_s16 = int_to_ptr.vmem [resolvable:$true] %s105_s16  ;;  %s125_s19 = int_to_ptr.hbm [resolvable:$true] %s124_s19 }
  0x1a   :  { %108 = dma.hbm_to_vmem [thread:$0]  %s104_s28, 256, %s106_s16, [#allocation12]  }
  0x1b   :  { %s3577_s4 = smov [#allocation16]   ;;  %s139_s7 = sshll.u32 %s3825_s11, 4  ;;  %s140_s7 = int_to_ptr.hbm [resolvable:$true] %s139_s7 }
  0x1c   :  { %s126_s30 = sshll.u32 %s3577_s4, 4  ;;  %s3578_s20 = smov 128   ;;  %s127_s30 = int_to_ptr.vmem [resolvable:$true] %s126_s30 }
  0x1d   :  { %s3579_s21 = smov 8   ;;  %s3580_s22 = smov [#allocation17]  }
  0x1e   :  { %132 = dma.hbm_to_vmem [thread:$0]  %s125_s19, 8192, %s127_s30, [#allocation15], %s3578_s20, %s3578_s20, %s3579_s21  }
  0x1f   :  { %s141_s23 = sshll.u32 %s3580_s22, 4  ;;  %s3581_s8 = smov 64   ;;  %s142_s23 = int_to_ptr.vmem [resolvable:$true] %s141_s23 }
  0x20   :  { %s3582_s24 = smov 4  }
  0x21   :  { %147 = dma.hbm_to_vmem [thread:$0]  %s140_s7, 2048, %s142_s23, [#allocation18], %s3581_s8, %s3581_s8, %s3582_s24  }
  0x22   :  { %3553 = dma.done.wait [#allocation3], 128  }
  0x23   :  { %3554 = vsyncadd [#allocation3], 4294967168 }
  0x24   :  { %3555 = dma.done.wait [#allocation6], 1152  }
  0x25   :  { %3556 = vsyncadd [#allocation6], 4294966144 }
  0x26   :  { %3557 = dma.done.wait [#allocation9], 128  }
  0x27   :  { %3558 = vsyncadd [#allocation9], 4294967168 }
  0x28   :  { %3559 = dma.done.wait [#allocation12], 16640  }
  0x29   :  { %3560 = vsyncadd [#allocation12], 4294950656 }
  0x2a   :  { %3561 = dma.done.wait [#allocation15], 8256  }
  0x2b   :  { %3562 = vsyncadd [#allocation15], 4294959040 }
  0x2c   :  { %3563 = dma.done.wait [#allocation18], 2048  }
  0x2d   :  { %3564 = vsyncadd [#allocation18], 4294965248  ;;  %v2196_v0 = vld [vmem:[#allocation7 + $0x20] sm:$0xf]  ;;  %v3056_v1 = vld [vmem:[#allocation7 + $0x2c] sm:$0xf0] }
  0x2e   :  { %v2204_v2 = vld [vmem:[#allocation7 + $0x28] sm:$0xf]  ;;  %v2197_v3 = vor.u32 %v3056_v1, %v2196_v0  ;;  %v3057_v4 = vld [vmem:[#allocation7 + $0x34] sm:$0xf0]  ;;  %v2180_v5 = vld [vmem:[#allocation7] sm:$0xf] }
  0x2f   :  { %v3052_v6 = vld [vmem:[#allocation7 + $0xc] sm:$0xf0]  ;;  %v2205_v7 = vor.u32 %v3057_v4, %v2204_v2  ;;  %v3054_v8 = vld [vmem:[#allocation7 + $0x24] sm:$0xf]  ;;  %v2198_v9 = vld [vmem:[#allocation7 + $0x30] sm:$0xf0] }
  0x30   :  { %v2188_v10 = vld [vmem:[#allocation7 + $0x8] sm:$0xf]  ;;  %264 = vmatpush.bf16.msra.mxu3 %v2197_v3  ;;  %v2181_v11 = vor.u32 %v3052_v6, %v2180_v5  ;;  %v2201_v12 = vor.u32 %v3054_v8, %v2198_v9  ;;  %v3053_v13 = vld [vmem:[#allocation7 + $0x14] sm:$0xf0]  ;;  %v193_v14 = vld [vmem:[#allocation2] sm:$0xff]  ;;  %vm254_vm0 = vcmask 261120  }
  0x31   :  { %v3050_v15 = vld [vmem:[#allocation7 + $0x4] sm:$0xf]  ;;  %290 = vmatpush.bf16.msra.mxu2 %v2205_v7  ;;  %v2189_v16 = vor.u32 %v3053_v13, %v2188_v10  ;;  %v2182_v17 = vld [vmem:[#allocation7 + $0x10] sm:$0xf0]  ;;  %v3055_v18 = vld [vmem:[#allocation7 + $0x2c] sm:$0xf]  ;;  %v195_v24 = vpack.c.bf16 %v193_v14, %v193_v14 }
  0x32   :  { %v2206_v19 = vld [vmem:[#allocation7 + $0x38] sm:$0xf0]  ;;  %277 = vmatpush.bf16.msra.mxu1 %v2201_v12  ;;  %v2185_v20 = vor.u32 %v3050_v15, %v2182_v17  ;;  %v3051_v22 = vld [vmem:[#allocation7 + $0xc] sm:$0xf]  ;;  %v3690_v26 = vld [vmem:[#allocation8] sm:$0xf] }
  0x33   :  { %v2209_v21 = vor.u32 %v3055_v18, %v2206_v19  ;;  %v2190_v23 = vld [vmem:[#allocation7 + $0x18] sm:$0xf0]  ;;  %v206_v28 = vperm.slane %v3690_v26, 0  ;;  %v524_v29 = vld [vmem:[#allocation13] sm:$0xff]  ;;  %v525_v30 = vld [vmem:[#allocation13 + $0x8] sm:$0xff]  ;;  %vm540_vm1 = vcmask 1043456  }
  0x34   :  { %265 = vmatpush.bf16.msra.mxu3 %v2181_v11  ;;  %v2193_v25 = vor.u32 %v3051_v22, %v2190_v23  ;;  %v528_v31 = vunpack.c.l.b16 %v524_v29  ;;  %v194_v32 = vld [vmem:[#allocation5] sm:$0xff]  ;;  %v529_v33 = vunpack.c.h.b16 %v524_v29  ;;  %v530_v34 = vunpack.c.l.b16 %v525_v30  ;;  %v2332_v35 = vld [vmem:[#allocation11 + $0xe0] sm:$0xf]  ;;  %s3584_s27 = smov [#allocation19]   ;;  %s2163_s15 = sshll.u32 %s3828_s14, 4  ;;  %s2164_s15 = int_to_ptr.hbm [resolvable:$true] %s2163_s15 }
  0x35   :  { %291 = vmatpush.bf16.msra.mxu2 %v2189_v16  ;;  %v2460_v36 = vld [vmem:[#allocation11 + $0x1e0] sm:$0xf]  ;;  %v531_v37 = vunpack.c.h.b16 %v525_v30  ;;  %v3120_v38 = vld [vmem:[#allocation11 + $0x1ec] sm:$0xf0]  ;;  %v207_v49 = vperm.slane %v3690_v26, 1  ;;  %v3697_v57 = vpack.c.bf16 %v194_v32, %v194_v32  ;;  %vm536_vm2 = vcmask 64512  }
  0x36   :  { %278 = vmatpush.bf16.msra.mxu1 %v2185_v20  ;;  %v2588_v39 = vld [vmem:[#allocation11 + $0x2e0] sm:$0xf]  ;;  %v3152_v40 = vld [vmem:[#allocation11 + $0x2ec] sm:$0xf0]  ;;  %v532_v42 = vpack.c.b16 %v528_v31, %v528_v31  ;;  %v533_v43 = vpack.c.b16 %v529_v33, %v529_v33  ;;  %v534_v44 = vpack.c.b16 %v530_v34, %v530_v34  ;;  %v2461_v46 = vor.u32 %v3120_v38, %v2460_v36  ;;  %s2161_s28 = sshll.u32 %s3584_s27, 4  ;;  %s2162_s28 = int_to_ptr.vmem [resolvable:$true] %s2161_s28 }
  0x37   :  { %2210 = vmatmul.msk.bf16.vlgmr.msra.gmra.mxu3 %vm254_vm0, %v195_v24  ;;  %v3088_v45 = vld [vmem:[#allocation11 + $0xec] sm:$0xf0]  ;;  %v2716_v47 = vld [vmem:[#allocation11 + $0x3e0] sm:$0xf]  ;;  %v535_v51 = vpack.c.b16 %v531_v37, %v531_v37  ;;  %v2589_v52 = vor.u32 %v3152_v40, %v2588_v39  ;;  %v209_v29 = vperm.slane %v3690_v26, 3  ;;  %vm2154_vm7 = vcmask 57344  }
  0x38   :  { %303 = vmatpush.bf16.msrb.mxu3 %v2209_v21  ;;  %2212 = vmatmul.msk.bf16.vlgmr.msra.gmra.mxu2 %vm254_vm0, %v195_v24  ;;  %v3184_v48 = vld [vmem:[#allocation11 + $0x3ec] sm:$0xf0]  ;;  %v2444_v54 = vld [vmem:[#allocation11 + $0x1c0] sm:$0xf]  ;;  %v542_v56 = vsel %vm540_vm1, %v532_v42, 0  ;;  %v545_v58 = vsel %vm540_vm1, %v533_v43, 0  ;;  %v2333_v62 = vor.u32 %v3088_v45, %v2332_v35 }
  0x39   :  { %2211 = vmatmul.msk.bf16.vlgmr.msra.gmra.mxu1 %vm254_vm0, %v195_v24  ;;  %v2717_v53 = vor.u32 %v3184_v48, %v2716_v47  ;;  %v3116_v55 = vld [vmem:[#allocation11 + $0x1cc] sm:$0xf0]  ;;  %v548_v59 = vsel %vm540_vm1, %v534_v44, 0  ;;  %v2572_v60 = vld [vmem:[#allocation11 + $0x2c0] sm:$0xf]  ;;  %560 = vmatpush.bf16.msra.mxu0 %v542_v56  ;;  %v551_v61 = vsel %vm540_vm1, %v535_v51, 0 }
  0x3a   :  { %1258 = vmatpush.bf16.msrb.mxu1 %v2461_v46  ;;  %586 = vmatpush.bf16.msrb.mxu2 %v548_v59  ;;  %v3148_v63 = vld [vmem:[#allocation11 + $0x2cc] sm:$0xf0]  ;;  %v2700_v0 = vld [vmem:[#allocation11 + $0x3c0] sm:$0xf]  ;;  %v2445_v4 = vor.u32 %v3116_v55, %v2444_v54  ;;  %v208_v21 = vperm.slane %v3690_v26, 2 }
  0x3b   :  { %v2316_v2 = vld [vmem:[#allocation11 + $0xc0] sm:$0xf]  ;;  %v3084_v3 = vld [vmem:[#allocation11 + $0xcc] sm:$0xf0]  ;;  %v2573_v6 = vor.u32 %v3148_v63, %v2572_v60 }
  0x3c   :  { %304 = vmatpush.bf16.msrb.mxu3 %v2193_v25  ;;  %v3180_v5 = vld [vmem:[#allocation11 + $0x3cc] sm:$0xf0]  ;;  %v2428_v8 = vld [vmem:[#allocation11 + $0x1a0] sm:$0xf]  ;;  %2214 = vmatmul.msk.bf16.vlgmr.msra.gmra.mxu0 %vm536_vm2, %v3697_v57  ;;  %v2317_v15 = vor.u32 %v3084_v3, %v2316_v2 }
  0x3d   :  { %573 = vmatpush.bf16.msrb.mxu0 %v545_v58  ;;  %v2701_v7 = vor.u32 %v3180_v5, %v2700_v0  ;;  %v3112_v9 = vld [vmem:[#allocation11 + $0x1ac] sm:$0xf0]  ;;  %v2556_v10 = vld [vmem:[#allocation11 + $0x2a0] sm:$0xf] }
  0x3e   :  { %1271 = vmatpush.bf16.msra.mxu2 %v2589_v52  ;;  %1259 = vmatpush.bf16.msrb.mxu1 %v2445_v4  ;;  %v2429_v11 = vor.u32 %v3112_v9, %v2428_v8  ;;  %v3144_v12 = vld [vmem:[#allocation11 + $0x2ac] sm:$0xf0]  ;;  %v2684_v13 = vld [vmem:[#allocation11 + $0x3a0] sm:$0xf]  ;;  %v3583_v52 = vmov 512.0  }
  0x3f   :  { %v3176_v14 = vld [vmem:[#allocation11 + $0x3ac] sm:$0xf0]  ;;  %v2300_v18 = vld [vmem:[#allocation11 + $0xa0] sm:$0xf]  ;;  %v2557_v23 = vor.u32 %v3144_v12, %v2556_v10  ;;  %3285 = vrcp.f32 %v3583_v52  ;;  %v2590_v52 = vld [vmem:[#allocation11 + $0x2f0] sm:$0xf0] }
  0x40   :  { %599 = vmatpush.bf16.msra.mxu3 %v551_v61  ;;  %v3080_v19 = vld [vmem:[#allocation11 + $0xac] sm:$0xf0]  ;;  %v2412_v43 = vld [vmem:[#allocation11 + $0x180] sm:$0xf] }
  0x41   :  { %1245 = vmatpush.bf16.msra.mxu0 %v2333_v62  ;;  %v2301_v25 = vor.u32 %v3080_v19, %v2300_v18  ;;  %v3076_v42 = vld [vmem:[#allocation11 + $0x8c] sm:$0xf0]  ;;  %v2540_v46 = vld [vmem:[#allocation11 + $0x280] sm:$0xf] }
  0x42   :  { %1272 = vmatpush.bf16.msra.mxu2 %v2573_v6  ;;  %1260 = vmatpush.bf16.msrb.mxu1 %v2429_v11  ;;  %v3108_v45 = vld [vmem:[#allocation11 + $0x18c] sm:$0xf0]  ;;  %v2268_v54 = vld [vmem:[#allocation11 + $0x60] sm:$0xf] }
  0x43   :  { %v3140_v47 = vld [vmem:[#allocation11 + $0x28c] sm:$0xf0]  ;;  %v2413_v48 = vor.u32 %v3108_v45, %v2412_v43  ;;  %v2396_v56 = vld [vmem:[#allocation11 + $0x160] sm:$0xf] }
  0x44   :  { %v3172_v51 = vld [vmem:[#allocation11 + $0x38c] sm:$0xf0]  ;;  %v2524_v59 = vld [vmem:[#allocation11 + $0x260] sm:$0xf] }
  0x45   :  { %1246 = vmatpush.bf16.msra.mxu0 %v2317_v15  ;;  %v3072_v55 = vld [vmem:[#allocation11 + $0x6c] sm:$0xf0]  ;;  %v2652_v63 = vld [vmem:[#allocation11 + $0x360] sm:$0xf]  ;;  %v3735_v2 = vpop.eup %3285 }
  0x46   :  { %1273 = vmatpush.bf16.msra.mxu2 %v2557_v23  ;;  %1261 = vmatpush.bf16.msrb.mxu1 %v2413_v48  ;;  %v3104_v58 = vld [vmem:[#allocation11 + $0x16c] sm:$0xf0]  ;;  %v2252_v3 = vld [vmem:[#allocation11 + $0x40] sm:$0xf]  ;;  %v2462_v48 = vld [vmem:[#allocation11 + $0x1f0] sm:$0xf0]  ;;  %vm320_vm3 = vweird.f32 %v3735_v2 }
  0x47   :  { %2213 = vmatmul.msk.bf16.vlgmr.msrb.gmra.mxu3 %vm254_vm0, %v195_v24  ;;  %v2685_v24 = vor.u32 %v3176_v14, %v2684_v13  ;;  %v3136_v60 = vld [vmem:[#allocation11 + $0x26c] sm:$0xf0]  ;;  %v2397_v61 = vor.u32 %v3104_v58, %v2396_v56  ;;  %v2380_v5 = vld [vmem:[#allocation11 + $0x140] sm:$0xf]  ;;  %v3738_v14 = vmul.f32 512.0, %v3735_v2 }
  0x48   :  { %1284 = vmatpush.bf16.msrb.mxu3 %v2717_v53  ;;  %2216 = vmatmul.msk.bf16.vlgmr.msrb.gmra.mxu2 %vm536_vm2, %v3697_v57  ;;  %v2525_v62 = vor.u32 %v3136_v60, %v2524_v59  ;;  %v3168_v0 = vld [vmem:[#allocation11 + $0x36c] sm:$0xf0]  ;;  %v2508_v8 = vld [vmem:[#allocation11 + $0x240] sm:$0xf]  ;;  %v3082_v56 = vld [vmem:[#allocation11 + $0xc4] sm:$0xf] }
  0x49   :  { %1247 = vmatpush.bf16.msra.mxu0 %v2301_v25  ;;  %v3068_v4 = vld [vmem:[#allocation11 + $0x4c] sm:$0xf0]  ;;  %v2636_v12 = vld [vmem:[#allocation11 + $0x340] sm:$0xf]  ;;  %v3114_v60 = vld [vmem:[#allocation11 + $0x1c4] sm:$0xf] }
  0x4a   :  { %1262 = vmatpush.bf16.msrb.mxu1 %v2397_v61  ;;  %v2253_v6 = vor.u32 %v3068_v4, %v2252_v3  ;;  %v3132_v9 = vld [vmem:[#allocation11 + $0x24c] sm:$0xf0]  ;;  %v2364_v19 = vld [vmem:[#allocation11 + $0x120] sm:$0xf]  ;;  %v2446_v61 = vld [vmem:[#allocation11 + $0x1d0] sm:$0xf0] }
  0x4b   :  { %v2509_v11 = vor.u32 %v3132_v9, %v2508_v8  ;;  %v3164_v13 = vld [vmem:[#allocation11 + $0x34c] sm:$0xf0]  ;;  %v2492_v23 = vld [vmem:[#allocation11 + $0x220] sm:$0xf]  ;;  %v2702_v3 = vld [vmem:[#allocation11 + $0x3d0] sm:$0xf0] }
  0x4c   :  { %1285 = vmatpush.bf16.msrb.mxu3 %v2701_v7  ;;  %2215 = vmatmul.msk.bf16.vlgmr.msrb.gmra.mxu0 %vm536_vm2, %v3697_v57  ;;  %v3100_v7 = vld [vmem:[#allocation11 + $0x14c] sm:$0xf0]  ;;  %v2637_v15 = vor.u32 %v3164_v13, %v2636_v12  ;;  %v3110_v8 = vld [vmem:[#allocation11 + $0x1a4] sm:$0xf]  ;;  %v2558_v13 = vld [vmem:[#allocation11 + $0x2b0] sm:$0xf0] }
  0x4d   :  { %v2381_v10 = vor.u32 %v3100_v7, %v2380_v5  ;;  %v3064_v18 = vld [vmem:[#allocation11 + $0x2c] sm:$0xf0]  ;;  %v2302_v7 = vld [vmem:[#allocation11 + $0xb0] sm:$0xf0]  ;;  %v3142_v12 = vld [vmem:[#allocation11 + $0x2a4] sm:$0xf] }
  0x4e   :  { %v3156_v43 = vld [vmem:[#allocation11 + $0x30c] sm:$0xf0] }
  0x4f   :  { %1263 = vmatpush.bf16.msrb.mxu1 %v2381_v10 }
  0x50   :  { %1286 = vmatpush.bf16.msrb.mxu3 %v2685_v24  ;;  %v3128_v24 = vld [vmem:[#allocation11 + $0x22c] sm:$0xf0] }
  0x57   :  { %2217 = vmatmul.msk.bf16.vlgmr.msra.gmra.mxu3 %vm536_vm2, %v3697_v57  ;;  %v2269_v57 = vor.u32 %v3072_v55, %v2268_v54  ;;  %v2718_v55 = vld [vmem:[#allocation11 + $0x3f0] sm:$0xf0] }
  0xb6   :  { %v3692_v27 = vpop.f32.mrf.mxu1 }
  0xb7   :  { %v3707_v16 = vadd.f32 %v3692_v27, %v207_v49  ;;  %v2541_v49 = vor.u32 %v3140_v47, %v2540_v46  ;;  %v2334_v46 = vld [vmem:[#allocation11 + $0xf0] sm:$0xf0]  ;;  %v3118_v47 = vld [vmem:[#allocation11 + $0x1e4] sm:$0xf] }
  0xb9   :  { %v324_v32 = vmul.f32 %v3707_v16, %v3707_v16  ;;  %1274 = vmatpush.bf16.msra.mxu2 %v2541_v49 }
  0xba   :  { %v267_v41 = vpop.f32.mrf.mxu3 }
  0xbb   :  { %v293_v50 = vpop.f32.mrf.mxu2  ;;  %v3713_v20 = vadd.f32 %v267_v41, %v206_v28  ;;  %v2284_v41 = vld [vmem:[#allocation11 + $0x80] sm:$0xf] }
  0xbc   :  { %v3716_v27 = vadd.f32 %v293_v50, %v208_v21  ;;  %v2285_v44 = vor.u32 %v3076_v42, %v2284_v41  ;;  %v2668_v50 = vld [vmem:[#allocation11 + $0x380] sm:$0xf] }
  0xbd   :  { %v310_v30 = vadd.f32 %v3707_v16, %v3713_v20  ;;  %v323_v31 = vmul.f32 %v3713_v20, %v3713_v20  ;;  %v2669_v53 = vor.u32 %v3172_v51, %v2668_v50  ;;  %1275 = vmatpush.bf16.msra.mxu2 %v2525_v62  ;;  %v2604_v42 = vld [vmem:[#allocation11 + $0x300] sm:$0xf]  ;;  %v2465_v50 = vor.u32 %v3118_v47, %v2462_v48  ;;  %v3150_v51 = vld [vmem:[#allocation11 + $0x2e4] sm:$0xf]  ;;  %v2654_v48 = vld [vmem:[#allocation11 + $0x370] sm:$0xf0] }
  0xbe   :  { %v282_v1 = vpop.f32.mrf.mxu1  ;;  %v325_v26 = vmul.f32 %v3716_v27, %v3716_v27  ;;  %1248 = vmatpush.bf16.msra.mxu0 %v2285_v44  ;;  %v3086_v44 = vld [vmem:[#allocation11 + $0xe4] sm:$0xf]  ;;  %v2605_v45 = vor.u32 %v3156_v43, %v2604_v42  ;;  %v2593_v54 = vor.u32 %v3150_v51, %v2590_v52  ;;  %v2398_v42 = vld [vmem:[#allocation11 + $0x170] sm:$0xf0] }
  0xbf   :  { %v311_v34 = vadd.f32 %v310_v30, %v3716_v27  ;;  %v327_v36 = vadd.f32 %v324_v32, %v323_v31  ;;  %1287 = vmatpush.bf16.msrb.mxu3 %v2669_v53  ;;  %v2653_v1 = vor.u32 %v3168_v0, %v2652_v63  ;;  %v2620_v30 = vld [vmem:[#allocation11 + $0x320] sm:$0xf]  ;;  %v317_v31 = vsub.f32 1.0, %v3738_v14  ;;  %v3182_v53 = vld [vmem:[#allocation11 + $0x3e4] sm:$0xf] }
  0xc0   :  { %v2337_v49 = vor.u32 %v3086_v44, %v2334_v46  ;;  %v2721_v58 = vor.u32 %v3182_v53, %v2718_v55  ;;  %v3146_v62 = vld [vmem:[#allocation11 + $0x2c4] sm:$0xf]  ;;  %v2449_v63 = vor.u32 %v3114_v60, %v2446_v61  ;;  %v2574_v0 = vld [vmem:[#allocation11 + $0x2d0] sm:$0xf0] }
  0xc1   :  { %v328_v39 = vadd.f32 %v327_v36, %v325_v26  ;;  %1276 = vmatpush.bf16.msra.mxu2 %v2509_v11  ;;  %v2348_v26 = vld [vmem:[#allocation11 + $0x100] sm:$0xf]  ;;  %v2577_v4 = vor.u32 %v3146_v62, %v2574_v0  ;;  %v318_v9 = vmul.f32 %v3735_v2, %v317_v31  ;;  %v2430_v11 = vld [vmem:[#allocation11 + $0x1b0] sm:$0xf0]  ;;  %v3134_v43 = vld [vmem:[#allocation11 + $0x264] sm:$0xf] }
  0xc2   :  { %v269_v17 = vpop.f32.mrf.mxu3  ;;  %1249 = vmatpush.bf16.msra.mxu0 %v2269_v57  ;;  %v2318_v57 = vld [vmem:[#allocation11 + $0xd0] sm:$0xf0]  ;;  %v2433_v14 = vor.u32 %v3110_v8, %v2430_v11  ;;  %v3166_v47 = vld [vmem:[#allocation11 + $0x364] sm:$0xf] }
  0xc3   :  { %v295_v22 = vpop.f32.mrf.mxu2  ;;  %1288 = vmatpush.bf16.msrb.mxu3 %v2653_v1  ;;  %v2236_v17 = vld [vmem:[#allocation11 + $0x20] sm:$0xf]  ;;  %v2321_v59 = vor.u32 %v3082_v56, %v2318_v57  ;;  %v3178_v1 = vld [vmem:[#allocation11 + $0x3c4] sm:$0xf]  ;;  %v2526_v44 = vld [vmem:[#allocation11 + $0x270] sm:$0xf0] }
  0xc4   :  { %v2237_v21 = vor.u32 %v3064_v18, %v2236_v17  ;;  %v3096_v22 = vld [vmem:[#allocation11 + $0x12c] sm:$0xf0]  ;;  %v2705_v5 = vor.u32 %v3178_v1, %v2702_v3  ;;  %v3174_v17 = vld [vmem:[#allocation11 + $0x3a4] sm:$0xf]  ;;  %v2686_v18 = vld [vmem:[#allocation11 + $0x3b0] sm:$0xf0]  ;;  %v2529_v46 = vor.u32 %v3134_v43, %v2526_v44 }
  0xc5   :  { %v2365_v25 = vor.u32 %v3096_v22, %v2364_v19  ;;  %v2689_v19 = vor.u32 %v3174_v17, %v2686_v18  ;;  %v2286_v22 = vld [vmem:[#allocation11 + $0x90] sm:$0xf0]  ;;  %v3098_v51 = vld [vmem:[#allocation11 + $0x144] sm:$0xf] }
  0xc6   :  { %1250 = vmatpush.bf16.msra.mxu0 %v2253_v6  ;;  %v3078_v6 = vld [vmem:[#allocation11 + $0xa4] sm:$0xf]  ;;  %v2382_v52 = vld [vmem:[#allocation11 + $0x150] sm:$0xf0] }
  0xc7   :  { %1289 = vmatpush.bf16.msrb.mxu3 %v2637_v15  ;;  %1264 = vmatpush.bf16.msrb.mxu1 %v2365_v25  ;;  %v2305_v10 = vor.u32 %v3078_v6, %v2302_v7  ;;  %v2561_v15 = vor.u32 %v3142_v12, %v2558_v13  ;;  %v2510_v55 = vld [vmem:[#allocation11 + $0x250] sm:$0xf0]  ;;  %v3162_v56 = vld [vmem:[#allocation11 + $0x344] sm:$0xf] }
  0xc8   :  { %v3062_v60 = vld [vmem:[#allocation11 + $0x24] sm:$0xf]  ;;  %v2238_v62 = vld [vmem:[#allocation11 + $0x30] sm:$0xf0] }
  0xc9   :  { %v2366_v0 = vld [vmem:[#allocation11 + $0x130] sm:$0xf0]  ;;  %v3126_v3 = vld [vmem:[#allocation11 + $0x224] sm:$0xf] }
  0xca   :  { %v306_v28 = vpop.f32.mrf.mxu3  ;;  %1251 = vmatpush.bf16.msra.mxu0 %v2237_v21  ;;  %v3074_v21 = vld [vmem:[#allocation11 + $0x84] sm:$0xf]  ;;  %v2622_v8 = vld [vmem:[#allocation11 + $0x330] sm:$0xf0] }
  0xcb   :  { %v3725_v33 = vadd.f32 %v306_v28, %v209_v29  ;;  %v2493_v29 = vor.u32 %v3128_v24, %v2492_v23  ;;  %v3160_v28 = vld [vmem:[#allocation11 + $0x32c] sm:$0xf0]  ;;  %v3106_v23 = vld [vmem:[#allocation11 + $0x184] sm:$0xf]  ;;  %v319_v24 = vadd.f32 %v3735_v2, %v318_v9  ;;  %v2289_v25 = vor.u32 %v3074_v21, %v2286_v22  ;;  %v2350_v17 = vld [vmem:[#allocation11 + $0x110] sm:$0xf0] }
  0xcc   :  { %v2621_v32 = vor.u32 %v3160_v28, %v2620_v30  ;;  %v3138_v30 = vld [vmem:[#allocation11 + $0x284] sm:$0xf]  ;;  %v2542_v28 = vld [vmem:[#allocation11 + $0x290] sm:$0xf0] }
  0xcd   :  { %v312_v35 = vadd.f32 %v311_v34, %v3725_v33  ;;  %v326_v37 = vmul.f32 %v3725_v33, %v3725_v33  ;;  %1277 = vmatpush.bf16.msra.mxu2 %v2493_v29  ;;  %v2220_v34 = vld [vmem:[#allocation11] sm:$0xf]  ;;  %v2414_v29 = vld [vmem:[#allocation11 + $0x190] sm:$0xf0]  ;;  %v3158_v7 = vld [vmem:[#allocation11 + $0x324] sm:$0xf] }
  0xce   :  { %1290 = vmatpush.bf16.msrb.mxu3 %v2621_v32  ;;  %v2417_v31 = vor.u32 %v3106_v23, %v2414_v29  ;;  %v2545_v32 = vor.u32 %v3138_v30, %v2542_v28  ;;  %v3058_v12 = vld [vmem:[#allocation11 + $0x4] sm:$0xf]  ;;  %v2478_v22 = vld [vmem:[#allocation11 + $0x210] sm:$0xf0] }
  0xcf   :  { %313 = vadd.xlane.f32.xlu0 %v312_v35  ;;  %v329_v40 = vadd.f32 %v328_v39, %v326_v37  ;;  %v3060_v35 = vld [vmem:[#allocation11 + $0xc] sm:$0xf0]  ;;  %v3122_v21 = vld [vmem:[#allocation11 + $0x204] sm:$0xf] }
  0xd0   :  { %v2221_v36 = vor.u32 %v3060_v35, %v2220_v34  ;;  %v3092_v37 = vld [vmem:[#allocation11 + $0x10c] sm:$0xf0]  ;;  %v3170_v34 = vld [vmem:[#allocation11 + $0x384] sm:$0xf]  ;;  %v2670_v35 = vld [vmem:[#allocation11 + $0x390] sm:$0xf0]  ;;  %v2481_v28 = vor.u32 %v3122_v21, %v2478_v22 }
  0xd1   :  { %v3124_v39 = vld [vmem:[#allocation11 + $0x20c] sm:$0xf0]  ;;  %v3154_v23 = vld [vmem:[#allocation11 + $0x304] sm:$0xf]  ;;  %v2324_v21 = vld [vmem:[#allocation11 + $0xc8] sm:$0xf] }
  0xd2   :  { %v308_v38 = vpop.f32.mrf.mxu3  ;;  %1252 = vmatpush.bf16.msra.mxu0 %v2221_v36  ;;  %1291 = vmatpush.bf16.msrb.mxu3 %v2605_v45  ;;  %v3085_v22 = vld [vmem:[#allocation11 + $0xd4] sm:$0xf0] }
  0xd3   :  { %v2476_v38 = vld [vmem:[#allocation11 + $0x200] sm:$0xf] }
  0xd4   :  { %v2477_v41 = vor.u32 %v3124_v39, %v2476_v38  ;;  %v2270_v38 = vld [vmem:[#allocation11 + $0x70] sm:$0xf0]  ;;  %v3102_v39 = vld [vmem:[#allocation11 + $0x164] sm:$0xf] }
  0xd5   :  { %v2401_v45 = vor.u32 %v3102_v39, %v2398_v42  ;;  %v369_v39 = vld [vmem:[%s3819_s5] sm:$0xf] }
  0xd6   :  { %1278 = vmatpush.bf16.msra.mxu2 %v2477_v41  ;;  %1297 = vmatpush.bf16.msrb.mxu0 %v2337_v49  ;;  %v3066_v49 = vld [vmem:[#allocation11 + $0x44] sm:$0xf] }
  0xd7   :  { %330 = vadd.xlane.f32.xlu0 %v329_v40  ;;  %v2349_v40 = vor.u32 %v3092_v37, %v2348_v26  ;;  %1336 = vmatpush.bf16.msra.mxu3 %v2721_v58  ;;  %v2673_v26 = vor.u32 %v3170_v34, %v2670_v35  ;;  %v3070_v37 = vld [vmem:[#allocation11 + $0x64] sm:$0xf]  ;;  %v2385_v58 = vor.u32 %v3098_v51, %v2382_v52  ;;  %v372_v51 = vperm.slane %v369_v39, 1 }
  0xd8   :  { %v2273_v41 = vor.u32 %v3070_v37, %v2270_v38  ;;  %v355_v37 = vld [vmem:[#allocation10] sm:$0xf]  ;;  %v374_v52 = vperm.slane %v369_v39, 3 }
  0xd9   :  { %1265 = vmatpush.bf16.msrb.mxu1 %v2349_v40  ;;  %v321_v40 = vsel %vm320_vm3, %v3735_v2, %v319_v24  ;;  %v3130_v2 = vld [vmem:[#allocation11 + $0x244] sm:$0xf]  ;;  %v2606_v24 = vld [vmem:[#allocation11 + $0x310] sm:$0xf0] }
  0xda   :  { %1323 = vmatpush.bf16.msrb.mxu2 %v2593_v54  ;;  %1298 = vmatpush.bf16.msrb.mxu0 %v2321_v59  ;;  %v2657_v54 = vor.u32 %v3166_v47, %v2654_v48  ;;  %v2638_v59 = vld [vmem:[#allocation11 + $0x350] sm:$0xf0]  ;;  %v2513_v61 = vor.u32 %v3130_v2, %v2510_v55  ;;  %v358_v47 = vperm.slane %v355_v37, 1  ;;  %v359_v48 = vperm.slane %v355_v37, 2 }
  0xdb   :  { %1337 = vmatpush.bf16.msra.mxu3 %v2705_v5  ;;  %v2641_v1 = vor.u32 %v3162_v56, %v2638_v59 }
  0xdd   :  { %1310 = vmatpush.bf16.msra.mxu1 %v2465_v50  ;;  %v2254_v50 = vld [vmem:[#allocation11 + $0x50] sm:$0xf0] }
  0xde   :  { %1324 = vmatpush.bf16.msrb.mxu2 %v2577_v4  ;;  %1299 = vmatpush.bf16.msrb.mxu0 %v2305_v10  ;;  %v2257_v57 = vor.u32 %v3066_v49, %v2254_v50  ;;  %v2494_v4 = vld [vmem:[#allocation11 + $0x230] sm:$0xf0]  ;;  %v2241_v10 = vor.u32 %v3062_v60, %v2238_v62  ;;  %v360_v49 = vperm.slane %v355_v37, 3  ;;  %v3089_v62 = vld [vmem:[#allocation11 + $0xf4] sm:$0xf0] }
  0xdf   :  { %1338 = vmatpush.bf16.msra.mxu3 %v2689_v19  ;;  %v2497_v13 = vor.u32 %v3126_v3, %v2494_v4  ;;  %v2625_v19 = vor.u32 %v3158_v7, %v2622_v8 }
  0xe1   :  { %1311 = vmatpush.bf16.msra.mxu1 %v2449_v63  ;;  %v3094_v63 = vld [vmem:[#allocation11 + $0x124] sm:$0xf] }
  0xe2   :  { %1325 = vmatpush.bf16.msrb.mxu2 %v2561_v15  ;;  %1300 = vmatpush.bf16.msrb.mxu0 %v2289_v25  ;;  %v2369_v11 = vor.u32 %v3094_v63, %v2366_v0  ;;  %v3090_v15 = vld [vmem:[#allocation11 + $0x104] sm:$0xf]  ;;  %v2468_v63 = vld [vmem:[#allocation11 + $0x1e8] sm:$0xf] }
  0xe3   :  { %1339 = vmatpush.bf16.msra.mxu3 %v2673_v26  ;;  %v2353_v30 = vor.u32 %v3090_v15, %v2350_v17 }
  0xe5   :  { %1312 = vmatpush.bf16.msra.mxu1 %v2433_v14  ;;  %v2222_v14 = vld [vmem:[#allocation11 + $0x10] sm:$0xf0] }
  0xe6   :  { %1326 = vmatpush.bf16.msrb.mxu2 %v2545_v32  ;;  %1301 = vmatpush.bf16.msrb.mxu0 %v2273_v41  ;;  %v2225_v29 = vor.u32 %v3058_v12, %v2222_v14  ;;  %v2609_v32 = vor.u32 %v3154_v23, %v2606_v24  ;;  %v3185_v12 = vld [vmem:[#allocation11 + $0x3f4] sm:$0xf0] }
  0xe7   :  { %1340 = vmatpush.bf16.msra.mxu3 %v2657_v54 }
  0xe9   :  { %1313 = vmatpush.bf16.msra.mxu1 %v2417_v31 }
  0xea   :  { %1327 = vmatpush.bf16.msrb.mxu2 %v2529_v46  ;;  %1302 = vmatpush.bf16.msrb.mxu0 %v2257_v57  ;;  %v371_v46 = vperm.slane %v369_v39, 0 }
  0xeb   :  { %1341 = vmatpush.bf16.msra.mxu3 %v2641_v1 }
  0xed   :  { %1314 = vmatpush.bf16.msra.mxu1 %v2401_v45  ;;  %v357_v45 = vperm.slane %v355_v37, 0  ;;  %v3081_v37 = vld [vmem:[#allocation11 + $0xb4] sm:$0xf0] }
  0xee   :  { %1328 = vmatpush.bf16.msrb.mxu2 %v2513_v61  ;;  %1303 = vmatpush.bf16.msrb.mxu0 %v2241_v10  ;;  %v2340_v61 = vld [vmem:[#allocation11 + $0xe8] sm:$0xf]  ;;  %v3153_v10 = vld [vmem:[#allocation11 + $0x2f4] sm:$0xf0] }
  0xef   :  { %1342 = vmatpush.bf16.msra.mxu3 %v2625_v19  ;;  %v2341_v14 = vor.u32 %v3089_v62, %v2340_v61  ;;  %v2532_v61 = vld [vmem:[#allocation11 + $0x268] sm:$0xf]  ;;  %v3137_v62 = vld [vmem:[#allocation11 + $0x274] sm:$0xf0] }
  0xf1   :  { %1315 = vmatpush.bf16.msra.mxu1 %v2385_v58 }
  0xf2   :  { %1329 = vmatpush.bf16.msrb.mxu2 %v2497_v13  ;;  %1304 = vmatpush.bf16.msrb.mxu0 %v2225_v29  ;;  %v2452_v29 = vld [vmem:[#allocation11 + $0x1c8] sm:$0xf] }
  0xf3   :  { %1343 = vmatpush.bf16.msra.mxu3 %v2609_v32  ;;  %v2708_v32 = vld [vmem:[#allocation11 + $0x3c8] sm:$0xf] }
  0xf5   :  { %1316 = vmatpush.bf16.msra.mxu1 %v2369_v11  ;;  %v2724_v11 = vld [vmem:[#allocation11 + $0x3e8] sm:$0xf] }
  0xf6   :  { %1330 = vmatpush.bf16.msrb.mxu2 %v2481_v28  ;;  %v2580_v28 = vld [vmem:[#allocation11 + $0x2c8] sm:$0xf] }
  0xf9   :  { %1317 = vmatpush.bf16.msra.mxu1 %v2353_v30  ;;  %v3117_v30 = vld [vmem:[#allocation11 + $0x1d4] sm:$0xf0] }
 0x142   :  { %v314_v36 = vpop.xlane.xlu0 %313 }
 0x143   :  { %v3745_v53 = vmul.f32 %v321_v40, %v314_v36 }
 0x145   :  { %v333_v5 = vmul.f32 %v3745_v53, %v3745_v53  ;;  %v337_v41 = vsub.f32 %v3707_v16, %v3745_v53  ;;  %v338_v42 = vsub.f32 %v3716_v27, %v3745_v53  ;;  %v339_v43 = vsub.f32 %v3725_v33, %v3745_v53 }
 0x14a   :  { %v331_v6 = vpop.xlane.xlu0 %330 }
 0x14b   :  { %v332_v9 = vmul.f32 %v331_v6, %v321_v40  ;;  %v336_v40 = vsub.f32 %v3713_v20, %v3745_v53  ;;  %v373_v20 = vperm.slane %v369_v39, 2  ;;  %v2596_v6 = vld [vmem:[#allocation11 + $0x2e8] sm:$0xf] }
 0x14c   :  { %v2597_v24 = vor.u32 %v3153_v10, %v2596_v6  ;;  %v2533_v6 = vor.u32 %v3137_v62, %v2532_v61  ;;  %v2516_v10 = vld [vmem:[#allocation11 + $0x248] sm:$0xf]  ;;  %v3147_v61 = vld [vmem:[#allocation11 + $0x2cc] sm:$0xf]  ;;  %v2582_v62 = vld [vmem:[#allocation11 + $0x2d8] sm:$0xf0] }
 0x14d   :  { %v334_v18 = vsub.f32 %v332_v9, %v333_v5  ;;  %v3121_v5 = vld [vmem:[#allocation11 + $0x1f4] sm:$0xf0] }
 0x14e   :  { %v2469_v19 = vor.u32 %v3121_v5, %v2468_v63  ;;  %v2660_v63 = vld [vmem:[#allocation11 + $0x368] sm:$0xf]  ;;  %v3069_v5 = vld [vmem:[#allocation11 + $0x54] sm:$0xf0] }
 0x14f   :  { %v335_v25 = vmax.f32 %v334_v18, 0.0 }
 0x151   :  { %v340_v31 = vadd.f32 1e-05, %v335_v25  ;;  %v2725_v25 = vor.u32 %v3185_v12, %v2724_v11  ;;  %v3133_v11 = vld [vmem:[#allocation11 + $0x254] sm:$0xf0]  ;;  %v2644_v12 = vld [vmem:[#allocation11 + $0x348] sm:$0xf] }
 0x153   :  { %3287 = vrsqrt.f32 %v340_v31  ;;  %vm347_vm5 = vweird.f32 %v340_v31 }
 0x159   :  { %v3288_v34 = vpop.eup %3287 }
 0x15a   :  { %v342_v35 = vmul.f32 %v3288_v34, %v340_v31  ;;  %vm348_vm4 = vweird.f32 %v3288_v34  ;;  %v3149_v31 = vld [vmem:[#allocation11 + $0x2d4] sm:$0xf0] }
 0x15b   :  { %vm349_vm6 = vmor %vm347_vm5, %vm348_vm4 }
 0x15c   :  { %v343_v26 = vmul.f32 %v3288_v34, %v342_v35  ;;  %v2325_v35 = vor.u32 %v3085_v22, %v2324_v21  ;;  %v2244_v21 = vld [vmem:[#allocation11 + $0x28] sm:$0xf]  ;;  %v3065_v22 = vld [vmem:[#allocation11 + $0x34] sm:$0xf0] }
 0x15e   :  { %v344_v36 = vmul.f32 0.5, %v343_v26  ;;  %v2453_v26 = vor.u32 %v3117_v30, %v2452_v29  ;;  %v2372_v29 = vld [vmem:[#allocation11 + $0x128] sm:$0xf]  ;;  %v3097_v30 = vld [vmem:[#allocation11 + $0x134] sm:$0xf0] }
 0x160   :  { %v345_v38 = vsub.f32 1.5, %v344_v36  ;;  %v2308_v36 = vld [vmem:[#allocation11 + $0xa8] sm:$0xf] }
 0x162   :  { %v346_v44 = vmul.f32 %v3288_v34, %v345_v38  ;;  %v2581_v38 = vor.u32 %v3149_v31, %v2580_v28  ;;  %v2500_v28 = vld [vmem:[#allocation11 + $0x228] sm:$0xf]  ;;  %v3129_v31 = vld [vmem:[#allocation11 + $0x234] sm:$0xf0] }
 0x164   :  { %v350_v50 = vsel %vm349_vm6, %v3288_v34, %v346_v44  ;;  %v3181_v34 = vld [vmem:[#allocation11 + $0x3d4] sm:$0xf0]  ;;  %v2692_v44 = vld [vmem:[#allocation11 + $0x3a8] sm:$0xf] }
 0x165   :  { %v351_v54 = vmul.f32 %v350_v50, %v336_v40  ;;  %v352_v16 = vmul.f32 %v350_v50, %v337_v41  ;;  %v353_v2 = vmul.f32 %v350_v50, %v338_v42  ;;  %v354_v55 = vmul.f32 %v350_v50, %v339_v43  ;;  %v2436_v40 = vld [vmem:[#allocation11 + $0x1a8] sm:$0xf]  ;;  %v3113_v41 = vld [vmem:[#allocation11 + $0x1b4] sm:$0xf0] }
 0x166   :  { %v2709_v39 = vor.u32 %v3181_v34, %v2708_v32  ;;  %v2564_v42 = vld [vmem:[#allocation11 + $0x2a8] sm:$0xf]  ;;  %v3145_v43 = vld [vmem:[#allocation11 + $0x2b4] sm:$0xf0] }
 0x167   :  { %v365_v27 = vmul.f32 %v357_v45, %v351_v54  ;;  %v366_v56 = vmul.f32 %v358_v47, %v352_v16  ;;  %v367_v57 = vmul.f32 %v359_v48, %v353_v2  ;;  %v368_v33 = vmul.f32 %v360_v49, %v354_v55  ;;  %v3177_v45 = vld [vmem:[#allocation11 + $0x3b4] sm:$0xf0]  ;;  %v2292_v48 = vld [vmem:[#allocation11 + $0x88] sm:$0xf] }
 0x168   :  { %v2437_v47 = vor.u32 %v3113_v41, %v2436_v40  ;;  %v3077_v49 = vld [vmem:[#allocation11 + $0x94] sm:$0xf0]  ;;  %v2565_v50 = vor.u32 %v3145_v43, %v2564_v42  ;;  %v2548_v54 = vld [vmem:[#allocation11 + $0x288] sm:$0xf]  ;;  %v2501_v40 = vor.u32 %v3129_v31, %v2500_v28  ;;  %v3107_v31 = vld [vmem:[#allocation11 + $0x18c] sm:$0xf] }
 0x169   :  { %v379_v53 = vadd.f32 %v371_v46, %v365_v27  ;;  %v380_v58 = vadd.f32 %v372_v51, %v366_v56  ;;  %v381_v59 = vadd.f32 %v373_v20, %v367_v57  ;;  %v382_v60 = vadd.f32 %v374_v52, %v368_v33  ;;  %v2420_v20 = vld [vmem:[#allocation11 + $0x188] sm:$0xf]  ;;  %v3109_v52 = vld [vmem:[#allocation11 + $0x194] sm:$0xf0] }
 0x16a   :  { %v2309_v46 = vor.u32 %v3081_v37, %v2308_v36  ;;  %v2693_v51 = vor.u32 %v3177_v45, %v2692_v44  ;;  %v3141_v16 = vld [vmem:[#allocation11 + $0x294] sm:$0xf0]  ;;  %v2676_v2 = vld [vmem:[#allocation11 + $0x388] sm:$0xf]  ;;  %v2293_v27 = vor.u32 %v3077_v49, %v2292_v48  ;;  %v2421_v56 = vor.u32 %v3109_v52, %v2420_v20  ;;  %v3119_v48 = vld [vmem:[#allocation11 + $0x1ec] sm:$0xf] }
 0x16b   :  { %v383_v0 = vmul.f32 0.01, %v379_v53  ;;  %v384_v1 = vmul.f32 0.01, %v380_v58  ;;  %v385_v3 = vmul.f32 0.01, %v381_v59  ;;  %v2373_v36 = vor.u32 %v3097_v30, %v2372_v29 }
 0x16c   :  { %v386_v4 = vmul.f32 0.01, %v382_v60  ;;  %v3173_v55 = vld [vmem:[#allocation11 + $0x394] sm:$0xf0]  ;;  %v2276_v57 = vld [vmem:[#allocation11 + $0x68] sm:$0xf] }
 0x16d   :  { %v387_v7 = vmax.f32 %v379_v53, %v383_v0  ;;  %v388_v8 = vmax.f32 %v380_v58, %v384_v1  ;;  %v389_v9 = vmax.f32 %v381_v59, %v385_v3  ;;  %v3073_v33 = vld [vmem:[#allocation11 + $0x74] sm:$0xf0]  ;;  %v2549_v53 = vor.u32 %v3141_v16, %v2548_v54  ;;  %v2404_v59 = vld [vmem:[#allocation11 + $0x168] sm:$0xf]  ;;  %v2470_v49 = vld [vmem:[#allocation11 + $0x1f8] sm:$0xf0] }
 0x16e   :  { %v390_v13 = vmax.f32 %v382_v60, %v386_v4  ;;  %v2677_v58 = vor.u32 %v3173_v55, %v2676_v2  ;;  %v3105_v60 = vld [vmem:[#allocation11 + $0x174] sm:$0xf0]  ;;  %v2277_v1 = vor.u32 %v3073_v33, %v2276_v57  ;;  %v2260_v4 = vld [vmem:[#allocation11 + $0x48] sm:$0xf]  ;;  %v2598_v52 = vld [vmem:[#allocation11 + $0x2f8] sm:$0xf0] }
 0x16f   :  { %v3760_v15 = vpack.c.bf16 %v387_v7, %v387_v7  ;;  %v3762_v17 = vpack.c.bf16 %v388_v8, %v388_v8  ;;  %v3764_v18 = vpack.c.bf16 %v389_v9, %v389_v9  ;;  %v3169_v0 = vld [vmem:[#allocation11 + $0x374] sm:$0xf0]  ;;  %v2405_v3 = vor.u32 %v3105_v60, %v2404_v59  ;;  %v2388_v8 = vld [vmem:[#allocation11 + $0x148] sm:$0xf]  ;;  %v3183_v54 = vld [vmem:[#allocation11 + $0x3ec] sm:$0xf] }
 0x170   :  { %v3766_v23 = vpack.c.bf16 %v390_v13, %v390_v13  ;;  %v2661_v7 = vor.u32 %v3169_v0, %v2660_v63  ;;  %v3101_v9 = vld [vmem:[#allocation11 + $0x154] sm:$0xf0]  ;;  %v2628_v32 = vld [vmem:[#allocation11 + $0x328] sm:$0xf]  ;;  %v2726_v16 = vld [vmem:[#allocation11 + $0x3f8] sm:$0xf0] }
 0x171   :  { %1253 = vmatmul.bf16.vlgmr.msra.gmra.mxu0 %v3760_v15  ;;  %1266 = vmatmul.bf16.vlgmr.msrb.gmra.mxu1 %v3762_v17  ;;  %v3165_v13 = vld [vmem:[#allocation11 + $0x354] sm:$0xf0]  ;;  %v2484_v42 = vld [vmem:[#allocation11 + $0x208] sm:$0xf]  ;;  %v3083_v57 = vld [vmem:[#allocation11 + $0xcc] sm:$0xf] }
 0x172   :  { %1279 = vmatmul.bf16.vlgmr.msra.gmra.mxu2 %v3764_v18  ;;  %1292 = vmatmul.bf16.vlgmr.msrb.gmra.mxu3 %v3766_v23  ;;  %v3161_v34 = vld [vmem:[#allocation11 + $0x334] sm:$0xf0]  ;;  %v2612_v44 = vld [vmem:[#allocation11 + $0x308] sm:$0xf]  ;;  %v2326_v33 = vld [vmem:[#allocation11 + $0xd8] sm:$0xf0] }
 0x173   :  { %1349 = vmatpush.bf16.msra.mxu0 %v2341_v14  ;;  %1362 = vmatpush.bf16.msrb.mxu1 %v2469_v19  ;;  %v2261_v14 = vor.u32 %v3069_v5, %v2260_v4  ;;  %v2389_v19 = vor.u32 %v3101_v9, %v2388_v8  ;;  %v3061_v37 = vld [vmem:[#allocation11 + $0x14] sm:$0xf0]  ;;  %v2629_v41 = vor.u32 %v3161_v34, %v2628_v32  ;;  %v3115_v59 = vld [vmem:[#allocation11 + $0x1cc] sm:$0xf]  ;;  %v2454_v60 = vld [vmem:[#allocation11 + $0x1d8] sm:$0xf0] }
 0x174   :  { %1375 = vmatpush.bf16.msra.mxu2 %v2597_v24  ;;  %1388 = vmatpush.bf16.msrb.mxu3 %v2725_v25  ;;  %v2517_v24 = vor.u32 %v3133_v11, %v2516_v10  ;;  %v2645_v25 = vor.u32 %v3165_v13, %v2644_v12  ;;  %v3125_v43 = vld [vmem:[#allocation11 + $0x214] sm:$0xf0]  ;;  %v3179_v63 = vld [vmem:[#allocation11 + $0x3cc] sm:$0xf]  ;;  %v2710_v0 = vld [vmem:[#allocation11 + $0x3d8] sm:$0xf0]  ;;  %v2585_v8 = vor.u32 %v3147_v61, %v2582_v62  ;;  %v3780_v13 = vpop.f32.mrf.mxu3 }
 0x175   :  { %v3157_v45 = vld [vmem:[#allocation11 + $0x314] sm:$0xf0]  ;;  %v2485_v2 = vor.u32 %v3125_v43, %v2484_v42  ;;  %v3079_v4 = vld [vmem:[#allocation11 + $0xac] sm:$0xf]  ;;  %v2310_v5 = vld [vmem:[#allocation11 + $0xb8] sm:$0xf0]  ;;  %v2713_v9 = vor.u32 %v3179_v63, %v2710_v0 }
 0x176   :  { %v2613_v55 = vor.u32 %v3157_v45, %v2612_v44  ;;  %v3111_v10 = vld [vmem:[#allocation11 + $0x1ac] sm:$0xf]  ;;  %v2438_v11 = vld [vmem:[#allocation11 + $0x1b8] sm:$0xf0] }
 0x177   :  { %1350 = vmatpush.bf16.msra.mxu0 %v2325_v35  ;;  %1363 = vmatpush.bf16.msrb.mxu1 %v2453_v26  ;;  %v2228_v35 = vld [vmem:[#allocation11 + $0x8] sm:$0xf]  ;;  %v2245_v26 = vor.u32 %v3065_v22, %v2244_v21  ;;  %v3143_v12 = vld [vmem:[#allocation11 + $0x2ac] sm:$0xf]  ;;  %v2694_v21 = vld [vmem:[#allocation11 + $0x3b8] sm:$0xf0]  ;;  %v2313_v22 = vor.u32 %v3079_v4, %v2310_v5 }
 0x178   :  { %1376 = vmatpush.bf16.msra.mxu2 %v2581_v38  ;;  %1389 = vmatpush.bf16.msrb.mxu3 %v2709_v39  ;;  %v2356_v38 = vld [vmem:[#allocation11 + $0x108] sm:$0xf]  ;;  %v3093_v39 = vld [vmem:[#allocation11 + $0x114] sm:$0xf0]  ;;  %v2294_v29 = vld [vmem:[#allocation11 + $0x98] sm:$0xf0] }
 0x179   :  { %v2357_v20 = vor.u32 %v3093_v39, %v2356_v38  ;;  %v2422_v32 = vld [vmem:[#allocation11 + $0x198] sm:$0xf0]  ;;  %v3139_v34 = vld [vmem:[#allocation11 + $0x28c] sm:$0xf] }
 0x17a   :  { %v2425_v38 = vor.u32 %v3107_v31, %v2422_v32  ;;  %v3071_v39 = vld [vmem:[#allocation11 + $0x6c] sm:$0xf]  ;;  %v2246_v62 = vld [vmem:[#allocation11 + $0x38] sm:$0xf0]  ;;  %v2788_v32 = vld [vmem:[#allocation16 + $0x70] sm:$0xf] }
 0x17b   :  { %1351 = vmatpush.bf16.msra.mxu0 %v2309_v46  ;;  %1364 = vmatpush.bf16.msrb.mxu1 %v2437_v47  ;;  %v3087_v46 = vld [vmem:[#allocation11 + $0xec] sm:$0xf]  ;;  %v2342_v47 = vld [vmem:[#allocation11 + $0xf8] sm:$0xf0] }
 0x17c   :  { %1377 = vmatpush.bf16.msra.mxu2 %v2565_v50  ;;  %1390 = vmatpush.bf16.msrb.mxu3 %v2693_v51  ;;  %v3151_v50 = vld [vmem:[#allocation11 + $0x2ec] sm:$0xf]  ;;  %v2229_v51 = vor.u32 %v3061_v37, %v2228_v35  ;;  %v2550_v35 = vld [vmem:[#allocation11 + $0x298] sm:$0xf0] }
 0x17d   :  { %v2553_v43 = vor.u32 %v3139_v34, %v2550_v35  ;;  %v3103_v45 = vld [vmem:[#allocation11 + $0x16c] sm:$0xf]  ;;  %v2374_v4 = vld [vmem:[#allocation11 + $0x138] sm:$0xf0]  ;;  %v2852_v35 = vld [vmem:[#allocation16 + $0xf0] sm:$0xf] }
 0x17e   :  { %v3063_v61 = vld [vmem:[#allocation11 + $0x2c] sm:$0xf]  ;;  %v2614_v31 = vld [vmem:[#allocation11 + $0x318] sm:$0xf0] }
 0x17f   :  { %1352 = vmatpush.bf16.msra.mxu0 %v2293_v27  ;;  %1365 = vmatpush.bf16.msrb.mxu1 %v2421_v56  ;;  %v2345_v27 = vor.u32 %v3087_v46, %v2342_v47  ;;  %v2473_v56 = vor.u32 %v3119_v48, %v2470_v49  ;;  %v2406_v46 = vld [vmem:[#allocation11 + $0x178] sm:$0xf0]  ;;  %v3135_v47 = vld [vmem:[#allocation11 + $0x26c] sm:$0xf]  ;;  %v603_v48 = vpop.f32.mrf.mxu3 }
 0x180   :  { %1378 = vmatpush.bf16.msra.mxu2 %v2549_v53  ;;  %1391 = vmatpush.bf16.msrb.mxu3 %v2677_v58  ;;  %v2601_v53 = vor.u32 %v3151_v50, %v2598_v52  ;;  %v2729_v58 = vor.u32 %v3183_v54, %v2726_v16  ;;  %v2534_v49 = vld [vmem:[#allocation11 + $0x278] sm:$0xf0]  ;;  %v3167_v50 = vld [vmem:[#allocation11 + $0x36c] sm:$0xf]  ;;  %v2409_v52 = vor.u32 %v3103_v45, %v2406_v46  ;;  %v2844_v45 = vld [vmem:[#allocation16 + $0xe0] sm:$0xf] }
 0x181   :  { %1305 = vmatmul.bf16.vlgmr.msrb.gmra.mxu0 %v3760_v15  ;;  %1318 = vmatmul.bf16.vlgmr.msra.gmra.mxu1 %v3762_v17  ;;  %v3067_v54 = vld [vmem:[#allocation11 + $0x4c] sm:$0xf]  ;;  %v2262_v16 = vld [vmem:[#allocation11 + $0x58] sm:$0xf0]  ;;  %v2772_v48 = vld [vmem:[#allocation16 + $0x50] sm:$0xf] }
 0x182   :  { %1331 = vmatmul.bf16.vlgmr.msrb.gmra.mxu2 %v3764_v18  ;;  %1344 = vmatmul.bf16.vlgmr.msra.gmra.mxu3 %v3766_v23  ;;  %v3127_v5 = vld [vmem:[#allocation11 + $0x22c] sm:$0xf]  ;;  %v3215_v46 = vld [vmem:[#allocation16 + $0xe4] sm:$0xf0] }
 0x183   :  { %1353 = vmatpush.bf16.msra.mxu0 %v2277_v1  ;;  %1366 = vmatpush.bf16.msrb.mxu1 %v2405_v3  ;;  %v2329_v1 = vor.u32 %v3083_v57, %v2326_v33  ;;  %v2457_v3 = vor.u32 %v3115_v59, %v2454_v60  ;;  %v3131_v57 = vld [vmem:[#allocation11 + $0x24c] sm:$0xf]  ;;  %v2518_v33 = vld [vmem:[#allocation11 + $0x258] sm:$0xf0]  ;;  %v2265_v59 = vor.u32 %v3067_v54, %v2262_v16  ;;  %v2764_v16 = vld [vmem:[#allocation16 + $0x40] sm:$0xf] }
 0x184   :  { %1379 = vmatpush.bf16.msra.mxu2 %v2533_v6  ;;  %1392 = vmatpush.bf16.msrb.mxu3 %v2661_v7  ;;  %v3776_v6 = vpop.f32.mrf.mxu0  ;;  %v3778_v7 = vpop.f32.mrf.mxu2  ;;  %v2521_v0 = vor.u32 %v3131_v57, %v2518_v33  ;;  %v3201_v34 = vld [vmem:[#allocation16 + $0x74] sm:$0xf0]  ;;  %v3191_v57 = vld [vmem:[#allocation16 + $0x24] sm:$0xf0] }
 0x187   :  { %1354 = vmatpush.bf16.msra.mxu0 %v2261_v14  ;;  %1367 = vmatpush.bf16.msrb.mxu1 %v2389_v19  ;;  %v2566_v14 = vld [vmem:[#allocation11 + $0x2b8] sm:$0xf0]  ;;  %v3175_v19 = vld [vmem:[#allocation11 + $0x3ac] sm:$0xf] }
 0x188   :  { %1380 = vmatpush.bf16.msra.mxu2 %v2517_v24  ;;  %1393 = vmatpush.bf16.msrb.mxu3 %v2645_v25  ;;  %v2441_v24 = vor.u32 %v3111_v10, %v2438_v11  ;;  %v3075_v25 = vld [vmem:[#allocation11 + $0x8c] sm:$0xf]  ;;  %v2569_v30 = vor.u32 %v3143_v12, %v2566_v14  ;;  %v2697_v28 = vor.u32 %v3175_v19, %v2694_v21  ;;  %v2630_v10 = vld [vmem:[#allocation11 + $0x338] sm:$0xf0] }
 0x189   :  { %v2297_v37 = vor.u32 %v3075_v25, %v2294_v29  ;;  %v2249_v11 = vor.u32 %v3063_v61, %v2246_v62  ;;  %v3059_v14 = vld [vmem:[#allocation11 + $0xc] sm:$0xf]  ;;  %v2230_v19 = vld [vmem:[#allocation11 + $0x18] sm:$0xf0] }
 0x18a   :  { %v3091_v21 = vld [vmem:[#allocation11 + $0x10c] sm:$0xf]  ;;  %v2358_v25 = vld [vmem:[#allocation11 + $0x118] sm:$0xf0] }
 0x18b   :  { %1355 = vmatpush.bf16.msra.mxu0 %v2245_v26  ;;  %1368 = vmatpush.bf16.msrb.mxu1 %v2373_v36  ;;  %v3171_v26 = vld [vmem:[#allocation11 + $0x38c] sm:$0xf]  ;;  %v2678_v36 = vld [vmem:[#allocation11 + $0x398] sm:$0xf0] }
 0x18c   :  { %1381 = vmatpush.bf16.msra.mxu2 %v2501_v40  ;;  %1394 = vmatpush.bf16.msrb.mxu3 %v2629_v41  ;;  %v2278_v40 = vld [vmem:[#allocation11 + $0x78] sm:$0xf0]  ;;  %v564_v41 = vpop.f32.mrf.mxu0  ;;  %v590_v42 = vpop.f32.mrf.mxu2  ;;  %v2681_v44 = vor.u32 %v3171_v26, %v2678_v36  ;;  %v3123_v29 = vld [vmem:[#allocation11 + $0x20c] sm:$0xf]  ;;  %v2233_v36 = vor.u32 %v3059_v14, %v2230_v19  ;;  %v2782_v14 = vld [vmem:[#allocation16 + $0x68] sm:$0xf0] }
 0x18d   :  { %v3217_v26 = vld [vmem:[#allocation16 + $0xf4] sm:$0xf0]  ;;  %v2789_v41 = vor.u32 %v3201_v34, %v2788_v32  ;;  %v2780_v42 = vld [vmem:[#allocation16 + $0x60] sm:$0xf]  ;;  %v3211_v62 = vld [vmem:[#allocation16 + $0xc4] sm:$0xf0] }
 0x18f   :  { %1356 = vmatpush.bf16.msra.mxu0 %v2229_v51  ;;  %1369 = vmatpush.bf16.msrb.mxu1 %v2357_v20  ;;  %v2662_v51 = vld [vmem:[#allocation11 + $0x378] sm:$0xf0]  ;;  %v2281_v20 = vor.u32 %v3071_v39, %v2278_v40 }
 0x190   :  { %1382 = vmatpush.bf16.msra.mxu2 %v2485_v2  ;;  %1395 = vmatpush.bf16.msrb.mxu3 %v2613_v55  ;;  %v2537_v2 = vor.u32 %v3135_v47, %v2534_v49  ;;  %v2665_v55 = vor.u32 %v3167_v50, %v2662_v51  ;;  %v2845_v49 = vor.u32 %v3215_v46, %v2844_v45  ;;  %v3197_v50 = vld [vmem:[#allocation16 + $0x54] sm:$0xf0]  ;;  %v2836_v51 = vld [vmem:[#allocation16 + $0xd0] sm:$0xf]  ;;  %v2892_v45 = vld [vmem:[#allocation16 + $0x140] sm:$0xf] }
 0x192   :  { %1357 = vmatmul.bf16.vlgmr.msra.gmra.mxu0 %v3760_v15  ;;  %1370 = vmatmul.bf16.vlgmr.msrb.gmra.mxu1 %v3762_v17 }
 0x193   :  { %1401 = vmatpush.bf16.msrb.mxu0 %v2345_v27  ;;  %1414 = vmatpush.bf16.msra.mxu1 %v2473_v56  ;;  %v3099_v27 = vld [vmem:[#allocation11 + $0x14c] sm:$0xf]  ;;  %v2390_v56 = vld [vmem:[#allocation11 + $0x158] sm:$0xf0] }
 0x194   :  { %1427 = vmatpush.bf16.msrb.mxu2 %v2601_v53  ;;  %1440 = vmatpush.bf16.msra.mxu3 %v2729_v58  ;;  %v3163_v53 = vld [vmem:[#allocation11 + $0x34c] sm:$0xf]  ;;  %v2646_v58 = vld [vmem:[#allocation11 + $0x358] sm:$0xf0]  ;;  %v2393_v60 = vor.u32 %v3099_v27, %v2390_v56  ;;  %v3786_v63 = vpop.f32.mrf.mxu0  ;;  %v2756_v27 = vld [vmem:[#allocation16 + $0x30] sm:$0xf] }
 0x195   :  { %1383 = vmatmul.bf16.vlgmr.msra.gmra.mxu2 %v3764_v18  ;;  %1396 = vmatmul.bf16.vlgmr.msrb.gmra.mxu3 %v3766_v23  ;;  %v2748_v56 = vld [vmem:[#allocation16 + $0x20] sm:$0xf] }
 0x196   :  { %v2749_v33 = vor.u32 %v3191_v57, %v2748_v56  ;;  %v2846_v57 = vld [vmem:[#allocation16 + $0xe8] sm:$0xf0] }
 0x197   :  { %1402 = vmatpush.bf16.msrb.mxu0 %v2329_v1  ;;  %1415 = vmatpush.bf16.msra.mxu1 %v2457_v3  ;;  %v2649_v1 = vor.u32 %v3163_v53, %v2646_v58  ;;  %v3095_v3 = vld [vmem:[#allocation11 + $0x12c] sm:$0xf]  ;;  %v2732_v58 = vld [vmem:[#allocation16] sm:$0xf] }
 0x198   :  { %1428 = vmatpush.bf16.msrb.mxu2 %v2585_v8  ;;  %1441 = vmatpush.bf16.msra.mxu3 %v2713_v9  ;;  %v2502_v8 = vld [vmem:[#allocation11 + $0x238] sm:$0xf0]  ;;  %v3159_v9 = vld [vmem:[#allocation11 + $0x32c] sm:$0xf]  ;;  %v2377_v12 = vor.u32 %v3095_v3, %v2374_v4 }
 0x199   :  { %v3189_v53 = vld [vmem:[#allocation16 + $0x14] sm:$0xf0] }
 0x19b   :  { %1403 = vmatpush.bf16.msrb.mxu0 %v2313_v22  ;;  %1416 = vmatpush.bf16.msra.mxu1 %v2441_v24  ;;  %v2505_v22 = vor.u32 %v3127_v5, %v2502_v8  ;;  %v2633_v24 = vor.u32 %v3159_v9, %v2630_v10  ;;  %v2820_v5 = vld [vmem:[#allocation16 + $0xb0] sm:$0xf]  ;;  %v3209_v8 = vld [vmem:[#allocation16 + $0xb4] sm:$0xf0] }
 0x19c   :  { %1429 = vmatpush.bf16.msrb.mxu2 %v2569_v30  ;;  %1442 = vmatpush.bf16.msra.mxu3 %v2697_v28  ;;  %v2486_v30 = vld [vmem:[#allocation11 + $0x218] sm:$0xf0]  ;;  %v3155_v28 = vld [vmem:[#allocation11 + $0x30c] sm:$0xf]  ;;  %v2916_v9 = vld [vmem:[#allocation16 + $0x170] sm:$0xf]  ;;  %v2821_v10 = vor.u32 %v3209_v8, %v2820_v5 }
 0x19d   :  { %v2489_v39 = vor.u32 %v3123_v29, %v2486_v30  ;;  %v2617_v40 = vor.u32 %v3155_v28, %v2614_v31  ;;  %v3231_v30 = vld [vmem:[#allocation16 + $0x164] sm:$0xf0]  ;;  %v3196_v28 = vld [vmem:[#allocation16 + $0x54] sm:$0xf]  ;;  %v2774_v31 = vld [vmem:[#allocation16 + $0x58] sm:$0xf0] }
 0x19e   :  { %v2777_v34 = vor.u32 %v3196_v28, %v2774_v31  ;;  %v3221_v5 = vld [vmem:[#allocation16 + $0x114] sm:$0xf0]  ;;  %v3208_v31 = vld [vmem:[#allocation16 + $0xb4] sm:$0xf] }
 0x19f   :  { %1404 = vmatpush.bf16.msrb.mxu0 %v2297_v37  ;;  %1417 = vmatpush.bf16.msra.mxu1 %v2425_v38  ;;  %v2361_v37 = vor.u32 %v3091_v21, %v2358_v25  ;;  %v577_v38 = vpop.f32.mrf.mxu0  ;;  %v2908_v25 = vld [vmem:[#allocation16 + $0x160] sm:$0xf]  ;;  %v3249_v28 = vld [vmem:[#allocation16 + $0x1f4] sm:$0xf0] }
 0x1a0   :  { %1430 = vmatpush.bf16.msrb.mxu2 %v2553_v43  ;;  %1443 = vmatpush.bf16.msra.mxu3 %v2681_v44  ;;  %v2853_v43 = vor.u32 %v3217_v26, %v2852_v35  ;;  %v3199_v44 = vld [vmem:[#allocation16 + $0x64] sm:$0xf0]  ;;  %v2909_v32 = vor.u32 %v3231_v30, %v2908_v25  ;;  %v2804_v35 = vld [vmem:[#allocation16 + $0x90] sm:$0xf]  ;;  %v3205_v26 = vld [vmem:[#allocation16 + $0x94] sm:$0xf0] }
 0x1a1   :  { %v2781_v47 = vor.u32 %v3199_v44, %v2780_v42  ;;  %v3229_v38 = vld [vmem:[#allocation16 + $0x154] sm:$0xf0]  ;;  %v3203_v44 = vld [vmem:[#allocation16 + $0x84] sm:$0xf0] }
 0x1a2   :  { %v3219_v25 = vld [vmem:[#allocation16 + $0x104] sm:$0xf0] }
 0x1a3   :  { %1405 = vmatpush.bf16.msrb.mxu0 %v2281_v20  ;;  %1418 = vmatpush.bf16.msra.mxu1 %v2409_v52  ;;  %v3213_v20 = vld [vmem:[#allocation16 + $0xd4] sm:$0xf0]  ;;  %v2773_v52 = vor.u32 %v3197_v50, %v2772_v48  ;;  %v3192_v48 = vld [vmem:[#allocation16 + $0x34] sm:$0xf] }
 0x1a4   :  { %1431 = vmatpush.bf16.msrb.mxu2 %v2537_v2  ;;  %1444 = vmatpush.bf16.msra.mxu3 %v2665_v55  ;;  %v2837_v54 = vor.u32 %v3213_v20, %v2836_v51  ;;  %v3195_v2 = vld [vmem:[#allocation16 + $0x44] sm:$0xf0]  ;;  %v3216_v20 = vld [vmem:[#allocation16 + $0xf4] sm:$0xf] }
 0x1a5   :  { %v2765_v55 = vor.u32 %v3195_v2, %v2764_v16  ;;  %v2884_v16 = vld [vmem:[#allocation16 + $0x130] sm:$0xf]  ;;  %v3225_v2 = vld [vmem:[#allocation16 + $0x134] sm:$0xf0] }
 0x1a7   :  { %1406 = vmatpush.bf16.msrb.mxu0 %v2265_v59  ;;  %1419 = vmatpush.bf16.msra.mxu1 %v2393_v60  ;;  %v3187_v59 = vld [vmem:[#allocation16 + $0x4] sm:$0xf0]  ;;  %v2828_v60 = vld [vmem:[#allocation16 + $0xc0] sm:$0xf] }
 0x1a8   :  { %1432 = vmatpush.bf16.msrb.mxu2 %v2521_v0  ;;  %1445 = vmatpush.bf16.msra.mxu3 %v2649_v1  ;;  %v2733_v61 = vor.u32 %v3187_v59, %v2732_v58  ;;  %v3200_v0 = vld [vmem:[#allocation16 + $0x74] sm:$0xf]  ;;  %v2790_v1 = vld [vmem:[#allocation16 + $0x78] sm:$0xf0]  ;;  %v2829_v3 = vor.u32 %v3211_v62, %v2828_v60 }
 0x1a9   :  { %v2793_v4 = vor.u32 %v3200_v0, %v2790_v1  ;;  %v3188_v58 = vld [vmem:[#allocation16 + $0x14] sm:$0xf]  ;;  %v2742_v59 = vld [vmem:[#allocation16 + $0x18] sm:$0xf0] }
 0x1aa   :  { %v3212_v60 = vld [vmem:[#allocation16 + $0xd4] sm:$0xf]  ;;  %v2838_v62 = vld [vmem:[#allocation16 + $0xd8] sm:$0xf0] }
 0x1ab   :  { %1407 = vmatpush.bf16.msrb.mxu0 %v2249_v11  ;;  %1420 = vmatpush.bf16.msra.mxu1 %v2377_v12  ;;  %v3233_v11 = vld [vmem:[#allocation16 + $0x174] sm:$0xf0]  ;;  %v3198_v12 = vld [vmem:[#allocation16 + $0x64] sm:$0xf]  ;;  %v2841_v0 = vor.u32 %v3212_v60, %v2838_v62  ;;  %v3243_v62 = vld [vmem:[#allocation16 + $0x1c4] sm:$0xf0] }
 0x1ac   :  { %1433 = vmatpush.bf16.msrb.mxu2 %v2505_v22  ;;  %1446 = vmatpush.bf16.msra.mxu3 %v2633_v24  ;;  %v2917_v19 = vor.u32 %v3233_v11, %v2916_v9  ;;  %v2785_v21 = vor.u32 %v3198_v12, %v2782_v14  ;;  %v2812_v22 = vld [vmem:[#allocation16 + $0xa0] sm:$0xf]  ;;  %v3207_v24 = vld [vmem:[#allocation16 + $0xa4] sm:$0xf0]  ;;  %v3186_v9 = vld [vmem:[#allocation16 + $0x4] sm:$0xf] }
 0x1ad   :  { %v2813_v29 = vor.u32 %v3207_v24, %v2812_v22  ;;  %v3210_v11 = vld [vmem:[#allocation16 + $0xc4] sm:$0xf]  ;;  %v2860_v24 = vld [vmem:[#allocation16 + $0x100] sm:$0xf] }
 0x1ae   :  { %v2861_v30 = vor.u32 %v3219_v25, %v2860_v24  ;;  %v2886_v24 = vld [vmem:[#allocation16 + $0x138] sm:$0xf0] }
 0x1af   :  { %1408 = vmatpush.bf16.msrb.mxu0 %v2233_v36  ;;  %1421 = vmatpush.bf16.msra.mxu1 %v2361_v37  ;;  %v2900_v36 = vld [vmem:[#allocation16 + $0x150] sm:$0xf]  ;;  %v2805_v37 = vor.u32 %v3205_v26, %v2804_v35 }
 0x1b0   :  { %1434 = vmatpush.bf16.msrb.mxu2 %v2489_v39  ;;  %1447 = vmatpush.bf16.msra.mxu3 %v2617_v40  ;;  %v3194_v39 = vld [vmem:[#allocation16 + $0x44] sm:$0xf]  ;;  %v2766_v40 = vld [vmem:[#allocation16 + $0x48] sm:$0xf0] }
 0x1b1   :  { %v2769_v42 = vor.u32 %v3194_v39, %v2766_v40 }
 0x1b2   :  { %1409 = vmatmul.bf16.vlgmr.msrb.gmra.mxu0 %v3760_v15  ;;  %1422 = vmatmul.bf16.vlgmr.msra.gmra.mxu1 %v3762_v17  ;;  %v3193_v15 = vld [vmem:[#allocation16 + $0x34] sm:$0xf0] }
 0x1b3   :  { %1869 = vmatpush.bf16.msra.mxu0 %v2789_v41  ;;  %1882 = vmatpush.bf16.msrb.mxu1 %v2853_v43  ;;  %v2757_v17 = vor.u32 %v3193_v15, %v2756_v27  ;;  %v2901_v41 = vor.u32 %v3229_v38, %v2900_v36  ;;  %v2796_v43 = vld [vmem:[#allocation16 + $0x80] sm:$0xf]  ;;  %v3190_v27 = vld [vmem:[#allocation16 + $0x24] sm:$0xf]  ;;  %v2750_v15 = vld [vmem:[#allocation16 + $0x28] sm:$0xf0] }
 0x1b4   :  { %1435 = vmatmul.bf16.vlgmr.msrb.gmra.mxu2 %v3764_v18  ;;  %1448 = vmatmul.bf16.vlgmr.msra.gmra.mxu3 %v3766_v23  ;;  %v2740_v18 = vld [vmem:[#allocation16 + $0x10] sm:$0xf]  ;;  %v2797_v46 = vor.u32 %v3203_v44, %v2796_v43  ;;  %v2753_v56 = vor.u32 %v3190_v27, %v2750_v15  ;;  %v3232_v36 = vld [vmem:[#allocation16 + $0x174] sm:$0xf]  ;;  %v2972_v44 = vld [vmem:[#allocation16 + $0x1e0] sm:$0xf] }
 0x1b5   :  { %v2741_v23 = vor.u32 %v3189_v53, %v2740_v18  ;;  %1895 = vmatpush.bf16.msra.mxu2 %v2917_v19  ;;  %v2876_v18 = vld [vmem:[#allocation16 + $0x120] sm:$0xf]  ;;  %v3223_v53 = vld [vmem:[#allocation16 + $0x124] sm:$0xf0]  ;;  %v2830_v19 = vld [vmem:[#allocation16 + $0xc8] sm:$0xf0] }
 0x1b6   :  { %v2833_v22 = vor.u32 %v3210_v11, %v2830_v19  ;;  %v3204_v27 = vld [vmem:[#allocation16 + $0x94] sm:$0xf]  ;;  %v2806_v15 = vld [vmem:[#allocation16 + $0x98] sm:$0xf0] }
 0x1b7   :  { %1870 = vmatpush.bf16.msra.mxu0 %v2781_v47  ;;  %1883 = vmatpush.bf16.msrb.mxu1 %v2845_v49  ;;  %v3227_v47 = vld [vmem:[#allocation16 + $0x144] sm:$0xf0]  ;;  %v2758_v49 = vld [vmem:[#allocation16 + $0x38] sm:$0xf0] }
 0x1b8   :  { %v2893_v50 = vor.u32 %v3227_v47, %v2892_v45  ;;  %v2761_v51 = vor.u32 %v3192_v48, %v2758_v49  ;;  %v3247_v45 = vld [vmem:[#allocation16 + $0x1e4] sm:$0xf0]  ;;  %v3206_v47 = vld [vmem:[#allocation16 + $0xa4] sm:$0xf]  ;;  %v2814_v48 = vld [vmem:[#allocation16 + $0xa8] sm:$0xf0] }
 0x1b9   :  { %1896 = vmatpush.bf16.msra.mxu2 %v2909_v32  ;;  %v2822_v32 = vld [vmem:[#allocation16 + $0xb8] sm:$0xf0]  ;;  %v3230_v49 = vld [vmem:[#allocation16 + $0x164] sm:$0xf] }
 0x1ba   :  { %v2825_v26 = vor.u32 %v3208_v31, %v2822_v32  ;;  %v3222_v31 = vld [vmem:[#allocation16 + $0x124] sm:$0xf] }
 0x1bb   :  { %1871 = vmatpush.bf16.msra.mxu0 %v2773_v52  ;;  %1884 = vmatpush.bf16.msrb.mxu1 %v2837_v54  ;;  %v2854_v52 = vld [vmem:[#allocation16 + $0xf8] sm:$0xf0] }
 0x1bc   :  { %v2857_v54 = vor.u32 %v3216_v20, %v2854_v52  ;;  %v2910_v20 = vld [vmem:[#allocation16 + $0x168] sm:$0xf0] }
 0x1bd   :  { %1897 = vmatpush.bf16.msra.mxu2 %v2901_v41  ;;  %v2913_v52 = vor.u32 %v3230_v49, %v2910_v20  ;;  %v3235_v20 = vld [vmem:[#allocation16 + $0x184] sm:$0xf0] }
 0x1bf   :  { %1872 = vmatpush.bf16.msra.mxu0 %v2765_v55  ;;  %1885 = vmatpush.bf16.msrb.mxu1 %v2829_v3  ;;  %v2885_v55 = vor.u32 %v3225_v2, %v2884_v16  ;;  %v2964_v16 = vld [vmem:[#allocation16 + $0x1d0] sm:$0xf]  ;;  %v3245_v2 = vld [vmem:[#allocation16 + $0x1d4] sm:$0xf0] }
 0x1c1   :  { %1898 = vmatpush.bf16.msra.mxu2 %v2893_v50 }
 0x1c3   :  { %1873 = vmatpush.bf16.msra.mxu0 %v2757_v17  ;;  %1886 = vmatpush.bf16.msrb.mxu1 %v2821_v10  ;;  %v3214_v17 = vld [vmem:[#allocation16 + $0xe4] sm:$0xf]  ;;  %v2734_v10 = vld [vmem:[#allocation16 + $0x8] sm:$0xf0] }
 0x1c4   :  { %v2737_v14 = vor.u32 %v3186_v9, %v2734_v10  ;;  %v2894_v10 = vld [vmem:[#allocation16 + $0x148] sm:$0xf0] }
 0x1c5   :  { %1899 = vmatpush.bf16.msra.mxu2 %v2885_v55  ;;  %v2965_v55 = vor.u32 %v3245_v2, %v2964_v16  ;;  %v2862_v16 = vld [vmem:[#allocation16 + $0x108] sm:$0xf0]  ;;  %v3248_v2 = vld [vmem:[#allocation16 + $0x1f4] sm:$0xf] }
 0x1c7   :  { %1874 = vmatpush.bf16.msra.mxu0 %v2749_v33  ;;  %1887 = vmatpush.bf16.msrb.mxu1 %v2813_v29  ;;  %v2849_v33 = vor.u32 %v3214_v17, %v2846_v57  ;;  %v2980_v29 = vld [vmem:[#allocation16 + $0x1f0] sm:$0xf]  ;;  %v3228_v17 = vld [vmem:[#allocation16 + $0x154] sm:$0xf]  ;;  %v2809_v57 = vor.u32 %v3204_v27, %v2806_v15 }
 0x1c8   :  { %v2981_v35 = vor.u32 %v3249_v28, %v2980_v29  ;;  %v3239_v28 = vld [vmem:[#allocation16 + $0x1a4] sm:$0xf0] }
 0x1ca   :  { %1908 = vmatpush.bf16.msrb.mxu3 %v2981_v35 }
 0x1cb   :  { %1875 = vmatpush.bf16.msra.mxu0 %v2741_v23  ;;  %1888 = vmatpush.bf16.msrb.mxu1 %v2805_v37  ;;  %v2877_v23 = vor.u32 %v3223_v53, %v2876_v18 }
 0x1cd   :  { %1900 = vmatpush.bf16.msra.mxu2 %v2877_v23 }
 0x1cf   :  { %1876 = vmatpush.bf16.msra.mxu0 %v2733_v61  ;;  %1889 = vmatpush.bf16.msrb.mxu1 %v2797_v46  ;;  %v2745_v61 = vor.u32 %v3188_v58, %v2742_v59  ;;  %v2973_v46 = vor.u32 %v3247_v45, %v2972_v44  ;;  %v3220_v44 = vld [vmem:[#allocation16 + $0x114] sm:$0xf]  ;;  %v2870_v45 = vld [vmem:[#allocation16 + $0x118] sm:$0xf0] }
 0x1d1   :  { %1909 = vmatpush.bf16.msrb.mxu3 %v2973_v46 }
 0x1d3   :  { %1921 = vmatpush.bf16.msrb.mxu0 %v2793_v4  ;;  %1934 = vmatpush.bf16.msra.mxu1 %v2857_v54  ;;  %v2868_v4 = vld [vmem:[#allocation16 + $0x110] sm:$0xf] }
 0x1d4   :  { %v2869_v8 = vor.u32 %v3221_v5, %v2868_v4  ;;  %v3226_v4 = vld [vmem:[#allocation16 + $0x144] sm:$0xf] }
 0x1d5   :  { %1910 = vmatpush.bf16.msrb.mxu3 %v2965_v55  ;;  %v2897_v11 = vor.u32 %v3226_v4, %v2894_v10 }
 0x1d6   :  { %1901 = vmatpush.bf16.msra.mxu2 %v2869_v8 }
 0x1d7   :  { %1922 = vmatpush.bf16.msrb.mxu0 %v2785_v21  ;;  %1935 = vmatpush.bf16.msra.mxu1 %v2849_v33  ;;  %v3793_v21 = vld [vmem:[#allocation14] sm:$0xf] }
 0x1d8   :  { %v1455_v41 = vperm.slane %v3793_v21, 0  ;;  %v2902_v33 = vld [vmem:[#allocation16 + $0x158] sm:$0xf0] }
 0x1d9   :  { %v2905_v23 = vor.u32 %v3228_v17, %v2902_v33 }
 0x1da   :  { %1902 = vmatpush.bf16.msra.mxu2 %v2861_v30  ;;  %v2940_v30 = vld [vmem:[#allocation16 + $0x1a0] sm:$0xf] }
 0x1db   :  { %1923 = vmatpush.bf16.msrb.mxu0 %v2777_v34  ;;  %1936 = vmatpush.bf16.msra.mxu1 %v2841_v0 }
 0x1df   :  { %1924 = vmatpush.bf16.msrb.mxu0 %v2769_v42  ;;  %1937 = vmatpush.bf16.msra.mxu1 %v2833_v22  ;;  %v3224_v22 = vld [vmem:[#allocation16 + $0x134] sm:$0xf] }
 0x1e0   :  { %v2889_v29 = vor.u32 %v3224_v22, %v2886_v24  ;;  %v3240_v22 = vld [vmem:[#allocation16 + $0x1b4] sm:$0xf]  ;;  %v2950_v24 = vld [vmem:[#allocation16 + $0x1b8] sm:$0xf0] }
 0x1e3   :  { %1925 = vmatpush.bf16.msrb.mxu0 %v2761_v51  ;;  %1938 = vmatpush.bf16.msra.mxu1 %v2825_v26  ;;  %v2817_v51 = vor.u32 %v3206_v47, %v2814_v48  ;;  %v1456_v26 = vperm.slane %v3793_v21, 1  ;;  %v2873_v47 = vor.u32 %v3220_v44, %v2870_v45  ;;  %v1458_v44 = vperm.slane %v3793_v21, 3 }
 0x1e7   :  { %1926 = vmatpush.bf16.msrb.mxu0 %v2753_v56  ;;  %1939 = vmatpush.bf16.msra.mxu1 %v2817_v51  ;;  %v2924_v51 = vld [vmem:[#allocation16 + $0x180] sm:$0xf] }
 0x1eb   :  { %1927 = vmatpush.bf16.msrb.mxu0 %v2745_v61  ;;  %v2956_v61 = vld [vmem:[#allocation16 + $0x1c0] sm:$0xf]  ;;  %1940 = vmatpush.bf16.msra.mxu1 %v2809_v57 }
 0x1ec   :  { %v2957_v0 = vor.u32 %v3243_v62, %v2956_v61  ;;  %v3244_v61 = vld [vmem:[#allocation16 + $0x1d4] sm:$0xf]  ;;  %v2966_v62 = vld [vmem:[#allocation16 + $0x1d8] sm:$0xf0] }
 0x1ee   :  { %v1254_v1 = vpop.f32.mrf.mxu0  ;;  %v1267_v3 = vpop.f32.mrf.mxu1  ;;  %1911 = vmatpush.bf16.msrb.mxu3 %v2957_v0 }
 0x1ef   :  { %v1255_v12 = vadd.f32 %v1254_v1, %v3776_v6  ;;  %1928 = vmatpush.bf16.msrb.mxu0 %v2737_v14  ;;  %v2918_v6 = vld [vmem:[#allocation16 + $0x178] sm:$0xf0]  ;;  %v3202_v1 = vld [vmem:[#allocation16 + $0x84] sm:$0xf]  ;;  %v3241_v14 = vld [vmem:[#allocation16 + $0x1b4] sm:$0xf0] }
 0x1f0   :  { %v2921_v39 = vor.u32 %v3232_v36, %v2918_v6 }
 0x1f1   :  { %v1268_v34 = vadd.f32 %v1267_v3, %v1255_v12  ;;  %v2798_v3 = vld [vmem:[#allocation16 + $0x88] sm:$0xf0]  ;;  %v2948_v12 = vld [vmem:[#allocation16 + $0x1b0] sm:$0xf] }
 0x1f2   :  { %1947 = vmatpush.bf16.msrb.mxu2 %v2921_v39  ;;  %v2801_v9 = vor.u32 %v3202_v1, %v2798_v3  ;;  %v2949_v19 = vor.u32 %v3241_v14, %v2948_v12  ;;  %v2932_v39 = vld [vmem:[#allocation16 + $0x190] sm:$0xf]  ;;  %v1457_v1 = vperm.slane %v3793_v21, 2  ;;  %v3255_v21 = vld [vmem:[#allocation17 + $0x28] sm:$0xff] }
 0x1f4   :  { %1941 = vmatpush.bf16.msra.mxu1 %v2801_v9  ;;  %1912 = vmatpush.bf16.msrb.mxu3 %v2949_v19  ;;  %v2958_v9 = vld [vmem:[#allocation16 + $0x1c8] sm:$0xf0] }
 0x1f5   :  { %v1280_v37 = vpop.f32.mrf.mxu2  ;;  %v1293_v38 = vpop.f32.mrf.mxu3 }
 0x1f6   :  { %v1281_v40 = vadd.f32 %v1280_v37, %v1268_v34  ;;  %v1256_v42 = vpop.f32.mrf.mxu0  ;;  %v1269_v43 = vpop.f32.mrf.mxu1  ;;  %1948 = vmatpush.bf16.msrb.mxu2 %v2913_v52  ;;  %v2941_v37 = vor.u32 %v3239_v28, %v2940_v30  ;;  %v2925_v52 = vor.u32 %v3235_v20, %v2924_v51  ;;  %v3238_v30 = vld [vmem:[#allocation16 + $0x1a4] sm:$0xf]  ;;  %v2942_v28 = vld [vmem:[#allocation16 + $0x1a8] sm:$0xf0] }
 0x1f8   :  { %v1294_v50 = vadd.f32 %v1293_v38, %v1281_v40  ;;  %v3237_v40 = vld [vmem:[#allocation16 + $0x194] sm:$0xf0]  ;;  %1913 = vmatpush.bf16.msrb.mxu3 %v2941_v37 }
 0x1f9   :  { %v2933_v43 = vor.u32 %v3237_v40, %v2932_v39 }
 0x1fa   :  { %v1463_v54 = vadd.f32 %v1455_v41, %v1294_v50  ;;  %1949 = vmatpush.bf16.msrb.mxu2 %v2905_v23 }
 0x1fc   :  { %v1467_v56 = vmul.f32 0.01, %v1463_v54  ;;  %1914 = vmatpush.bf16.msrb.mxu3 %v2933_v43 }
 0x1fd   :  { %v1282_v18 = vpop.f32.mrf.mxu2  ;;  %v1295_v53 = vpop.f32.mrf.mxu3 }
 0x1fe   :  { %v1471_v58 = vmax.f32 %v1463_v54, %v1467_v56  ;;  %v1306_v59 = vpop.f32.mrf.mxu0  ;;  %v1319_v60 = vpop.f32.mrf.mxu1  ;;  %1950 = vmatpush.bf16.msrb.mxu2 %v2897_v11  ;;  %v3218_v54 = vld [vmem:[#allocation16 + $0x104] sm:$0xf]  ;;  %v2982_v56 = vld [vmem:[#allocation16 + $0x1f8] sm:$0xf0]  ;;  %v2974_v53 = vld [vmem:[#allocation16 + $0x1e8] sm:$0xf0] }
 0x1ff   :  { %v1307_v8 = vadd.f32 %v1306_v59, %v3786_v63  ;;  %v2878_v63 = vld [vmem:[#allocation16 + $0x128] sm:$0xf0]  ;;  %v2865_v17 = vor.u32 %v3218_v54, %v2862_v16  ;;  %v2985_v57 = vor.u32 %v3248_v2, %v2982_v56  ;;  %v3246_v18 = vld [vmem:[#allocation16 + $0x1e4] sm:$0xf]  ;;  %v3257_v16 = vld [vmem:[#allocation17 + $0x38] sm:$0xff] }
 0x200   :  { %v1475_v5 = vpack.c.bf16 %v1471_v58, %v1471_v58  ;;  %v2881_v38 = vor.u32 %v3222_v31, %v2878_v63  ;;  %1915 = vmatpush.bf16.msrb.mxu3 %v2925_v52  ;;  %v2977_v23 = vor.u32 %v3246_v18, %v2974_v53  ;;  %v2934_v63 = vld [vmem:[#allocation16 + $0x198] sm:$0xf0]  ;;  %v3254_v56 = vld [vmem:[#allocation17 + $0x20] sm:$0xff]  ;;  %v3252_v53 = vld [vmem:[#allocation17 + $0x10] sm:$0xff] }
 0x201   :  { %v1320_v25 = vadd.f32 %v1319_v60, %v1307_v8 }
 0x202   :  { %1877 = vmatmul.bf16.vlgmr.msra.gmra.mxu0 %v1475_v5  ;;  %1951 = vmatpush.bf16.msrb.mxu2 %v2889_v29  ;;  %v2953_v29 = vor.u32 %v3240_v22, %v2950_v24 }
 0x203   :  { %2111 = vmatpush.bf16.msra.mxu0 %v3257_v16 }
 0x204   :  { %1960 = vmatpush.bf16.msra.mxu3 %v2985_v57  ;;  %v3265_v57 = vld [vmem:[#allocation17 + $0x78] sm:$0xff] }
 0x205   :  { %v1332_v32 = vpop.f32.mrf.mxu2  ;;  %v1345_v34 = vpop.f32.mrf.mxu3 }
 0x206   :  { %v1333_v35 = vadd.f32 %v1332_v32, %v1320_v25  ;;  %v1308_v36 = vpop.f32.mrf.mxu0  ;;  %v1321_v6 = vpop.f32.mrf.mxu1  ;;  %1952 = vmatpush.bf16.msrb.mxu2 %v2881_v38  ;;  %v2945_v32 = vor.u32 %v3238_v30, %v2942_v28 }
 0x207   :  { %v2926_v36 = vld [vmem:[#allocation16 + $0x188] sm:$0xf0] }
 0x208   :  { %v1346_v41 = vadd.f32 %v1345_v34, %v1333_v35  ;;  %1961 = vmatpush.bf16.msra.mxu3 %v2977_v23  ;;  %v3236_v34 = vld [vmem:[#allocation16 + $0x194] sm:$0xf] }
 0x209   :  { %v2937_v35 = vor.u32 %v3236_v34, %v2934_v63  ;;  %v3264_v23 = vld [vmem:[#allocation17 + $0x70] sm:$0xff] }
 0x20a   :  { %v1464_v42 = vadd.f32 %v1456_v26, %v1346_v41  ;;  %1953 = vmatpush.bf16.msrb.mxu2 %v2873_v47  ;;  %v3234_v26 = vld [vmem:[#allocation16 + $0x184] sm:$0xf] }
 0x20b   :  { %v2929_v6 = vor.u32 %v3234_v26, %v2926_v36 }
 0x20c   :  { %v1468_v46 = vmul.f32 0.01, %v1464_v42 }
 0x20d   :  { %v1334_v48 = vpop.f32.mrf.mxu2  ;;  %v1347_v49 = vpop.f32.mrf.mxu3 }
 0x20e   :  { %v1472_v50 = vmax.f32 %v1464_v42, %v1468_v46  ;;  %1954 = vmatpush.bf16.msrb.mxu2 %v2865_v17 }
 0x20f   :  { %v1358_v27 = vpop.f32.mrf.mxu0  ;;  %v1371_v15 = vpop.f32.mrf.mxu1 }
 0x210   :  { %v1476_v55 = vpack.c.bf16 %v1472_v50, %v1472_v50  ;;  %v1359_v33 = vadd.f32 %v1358_v27, %v3778_v7  ;;  %v2969_v7 = vor.u32 %v3244_v61, %v2966_v62  ;;  %v3256_v27 = vld [vmem:[#allocation17 + $0x30] sm:$0xff]  ;;  %v3250_v62 = vld [vmem:[#allocation17] sm:$0xff] }
 0x211   :  { %2112 = vmatpush.bf16.msra.mxu0 %v3256_v27 }
 0x212   :  { %1890 = vmatmul.bf16.vlgmr.msrb.gmra.mxu1 %v1476_v55  ;;  %1929 = vmatmul.bf16.vlgmr.msrb.gmra.mxu0 %v1475_v5  ;;  %v1372_v58 = vadd.f32 %v1371_v15, %v1359_v33  ;;  %v3242_v5 = vld [vmem:[#allocation16 + $0x1c4] sm:$0xf]  ;;  %v3253_v33 = vld [vmem:[#allocation17 + $0x18] sm:$0xff] }
 0x213   :  { %1962 = vmatpush.bf16.msra.mxu3 %v2969_v7  ;;  %v2961_v11 = vor.u32 %v3242_v5, %v2958_v9  ;;  %2124 = vmatpush.bf16.msrb.mxu1 %v3265_v57  ;;  %v3259_v7 = vld [vmem:[#allocation17 + $0x48] sm:$0xff]  ;;  %v1543_v5 = vld [vmem:[%s3824_s10] sm:$0x3]  ;;  %v3258_v9 = vld [vmem:[#allocation17 + $0x40] sm:$0xff] }
 0x214   :  { %v1546_v30 = vperm.slane %v1543_v5, 1 }
 0x215   :  { %2113 = vmatpush.bf16.msra.mxu0 %v3255_v21 }
 0x217   :  { %v1360_v3 = vpop.f32.mrf.mxu0  ;;  %v1373_v4 = vpop.f32.mrf.mxu1  ;;  %1963 = vmatpush.bf16.msra.mxu3 %v2961_v11  ;;  %2125 = vmatpush.bf16.msrb.mxu1 %v3264_v23 }
 0x218   :  { %v1384_v59 = vpop.f32.mrf.mxu2  ;;  %v1397_v60 = vpop.f32.mrf.mxu3  ;;  %v3260_v3 = vld [vmem:[#allocation17 + $0x50] sm:$0xff] }
 0x219   :  { %v1385_v0 = vadd.f32 %v1384_v59, %v1372_v58  ;;  %2114 = vmatpush.bf16.msra.mxu0 %v3254_v56  ;;  %v3251_v58 = vld [vmem:[#allocation17 + $0x8] sm:$0xff] }
 0x21a   :  { %v3263_v59 = vld [vmem:[#allocation17 + $0x68] sm:$0xff] }
 0x21b   :  { %v1398_v8 = vadd.f32 %v1397_v60, %v1385_v0  ;;  %1964 = vmatpush.bf16.msra.mxu3 %v2953_v29  ;;  %2126 = vmatpush.bf16.msrb.mxu1 %v3263_v59  ;;  %v3262_v0 = vld [vmem:[#allocation17 + $0x60] sm:$0xff] }
 0x21d   :  { %v1465_v10 = vadd.f32 %v1457_v1, %v1398_v8  ;;  %2115 = vmatpush.bf16.msra.mxu0 %v3253_v33  ;;  %v3261_v1 = vld [vmem:[#allocation17 + $0x58] sm:$0xff] }
 0x21f   :  { %v1469_v12 = vmul.f32 0.01, %v1465_v10  ;;  %1965 = vmatpush.bf16.msra.mxu3 %v2945_v32  ;;  %2127 = vmatpush.bf16.msrb.mxu1 %v3262_v0 }
 0x220   :  { %v1386_v14 = vpop.f32.mrf.mxu2  ;;  %v1399_v19 = vpop.f32.mrf.mxu3 }
 0x221   :  { %v1473_v25 = vmax.f32 %v1465_v10, %v1469_v12  ;;  %2116 = vmatpush.bf16.msra.mxu0 %v3252_v53  ;;  %v1545_v10 = vperm.slane %v1543_v5, 0 }
 0x222   :  { %1942 = vmatmul.bf16.vlgmr.msra.gmra.mxu1 %v1476_v55 }
 0x223   :  { %v1477_v31 = vpack.c.bf16 %v1473_v25, %v1473_v25  ;;  %1966 = vmatpush.bf16.msra.mxu3 %v2937_v35  ;;  %2128 = vmatpush.bf16.msrb.mxu1 %v3261_v1 }
 0x225   :  { %1903 = vmatmul.bf16.vlgmr.msra.gmra.mxu2 %v1477_v31  ;;  %2117 = vmatpush.bf16.msra.mxu0 %v3251_v58 }
 0x227   :  { %1967 = vmatpush.bf16.msra.mxu3 %v2929_v6  ;;  %2129 = vmatpush.bf16.msrb.mxu1 %v3260_v3 }
 0x229   :  { %2118 = vmatpush.bf16.msra.mxu0 %v3250_v62 }
 0x22b   :  { %2130 = vmatpush.bf16.msrb.mxu1 %v3259_v7 }
 0x22f   :  { %v1410_v37 = vpop.f32.mrf.mxu0  ;;  %v1423_v38 = vpop.f32.mrf.mxu1  ;;  %2131 = vmatpush.bf16.msrb.mxu1 %v3258_v9 }
 0x230   :  { %v1411_v39 = vadd.f32 %v1410_v37, %v3780_v13 }
 0x232   :  { %v1424_v40 = vadd.f32 %v1423_v38, %v1411_v39 }
 0x235   :  { %1955 = vmatmul.bf16.vlgmr.msrb.gmra.mxu2 %v1477_v31 }
 0x237   :  { %v1436_v41 = vpop.f32.mrf.mxu2  ;;  %v1449_v42 = vpop.f32.mrf.mxu3 }
 0x238   :  { %v1437_v43 = vadd.f32 %v1436_v41, %v1424_v40  ;;  %v1412_v45 = vpop.f32.mrf.mxu0  ;;  %v1425_v46 = vpop.f32.mrf.mxu1  ;;  %v3284_v41 = vld [vmem:[%s3826_s12] ss:$0 sm:$0xff] }
 0x23a   :  { %v1450_v47 = vadd.f32 %v1449_v42, %v1437_v43 }
 0x23c   :  { %v1466_v48 = vadd.f32 %v1458_v44, %v1450_v47 }
 0x23e   :  { %v1470_v49 = vmul.f32 0.01, %v1466_v48 }
 0x23f   :  { %v1438_v50 = vpop.f32.mrf.mxu2  ;;  %v1451_v51 = vpop.f32.mrf.mxu3 }
 0x240   :  { %v1474_v20 = vmax.f32 %v1466_v48, %v1470_v49  ;;  %v2139_v49 = vld [vmem:[%s3827_s13] sm:$0x1] }
 0x242   :  { %v1478_v52 = vpack.c.bf16 %v1474_v20, %v1474_v20 }
 0x244   :  { %1916 = vmatmul.bf16.vlgmr.msrb.gmra.mxu3 %v1478_v52 }
 0x254   :  { %1968 = vmatmul.bf16.vlgmr.msra.gmra.mxu3 %v1478_v52 }
 0x27f   :  { %v1878_v13 = vpop.f32.mrf.mxu0 }
 0x280   :  { %v1879_v11 = vadd.f32 %v1878_v13, %v1545_v10 }
 0x287   :  { %v1880_v54 = vpop.f32.mrf.mxu0 }
 0x28f   :  { %v1891_v2 = vpop.f32.mrf.mxu1  ;;  %v1930_v55 = vpop.f32.mrf.mxu0 }
 0x290   :  { %v1892_v14 = vadd.f32 %v1891_v2, %v1879_v11  ;;  %v1931_v32 = vadd.f32 %v1930_v55, %v1546_v30 }
 0x297   :  { %v1893_v15 = vpop.f32.mrf.mxu1  ;;  %v1932_v17 = vpop.f32.mrf.mxu0 }
 0x29f   :  { %v1943_v18 = vpop.f32.mrf.mxu1 }
 0x2a0   :  { %v1944_v34 = vadd.f32 %v1943_v18, %v1931_v32 }
 0x2a7   :  { %v1945_v61 = vpop.f32.mrf.mxu1 }
 0x2a8   :  { %v1904_v60 = vpop.f32.mrf.mxu2 }
 0x2a9   :  { %v1905_v19 = vadd.f32 %v1904_v60, %v1892_v14 }
 0x2b0   :  { %v1906_v4 = vpop.f32.mrf.mxu2 }
 0x2b8   :  { %v1956_v8 = vpop.f32.mrf.mxu2 }
 0x2b9   :  { %v1957_v63 = vadd.f32 %v1956_v8, %v1944_v34 }
 0x2c0   :  { %v1958_v12 = vpop.f32.mrf.mxu2 }
 0x2c7   :  { %v1917_v22 = vpop.f32.mrf.mxu3 }
 0x2c8   :  { %v1918_v24 = vadd.f32 %v1917_v22, %v1905_v19 }
 0x2ca   :  { %v1973_v25 = vmul.f32 0.01, %v1918_v24 }
 0x2cc   :  { %v1975_v29 = vmax.f32 %v1918_v24, %v1973_v25 }
 0x2ce   :  { %v1977_v28 = vpack.c.bf16 %v1975_v29, %v1975_v29 }
 0x2cf   :  { %v1919_v31 = vpop.f32.mrf.mxu3 }
 0x2d0   :  { %2119 = vmatmul.bf16.vlgmr.msra.gmra.mxu0 %v1977_v28 }
 0x2d7   :  { %v1969_v35 = vpop.f32.mrf.mxu3 }
 0x2d8   :  { %v1970_v26 = vadd.f32 %v1969_v35, %v1957_v63 }
 0x2da   :  { %v1974_v36 = vmul.f32 0.01, %v1970_v26 }
 0x2dc   :  { %v1976_v6 = vmax.f32 %v1970_v26, %v1974_v36 }
 0x2de   :  { %v1978_v37 = vpack.c.bf16 %v1976_v6, %v1976_v6 }
 0x2df   :  { %v1971_v38 = vpop.f32.mrf.mxu3 }
 0x2e0   :  { %2132 = vmatmul.bf16.vlgmr.msrb.gmra.mxu1 %v1978_v37 }
 0x34d   :  { %v2120_v39 = vpop.f32.mrf.mxu0 }
 0x34e   :  { %v2121_v42 = vadd.f32 %v3284_v41, %v2120_v39 }
 0x355   :  { %v2122_v40 = vpop.f32.mrf.mxu0 }
 0x35d   :  { %v2133_v43 = vpop.f32.mrf.mxu1 }
 0x35e   :  { %v2134_v44 = vadd.f32 %v2133_v43, %v2121_v42 }
 0x360   :  { %v2137_v45 = vmul.f32 0.01, %v2134_v44 }
 0x362   :  { %v2138_v46 = vmax.f32 %v2134_v44, %v2137_v45 }
 0x364   :  { %v2140_v47 = vpack.c.bf16 %v2138_v46, %v2138_v46 }
 0x365   :  { %v2135_v48 = vpop.f32.mrf.mxu1 }
 0x366   :  { %2148 = vmatpush.bf16.xpose.msra.mxu2 %v2140_v47 }
 0x36d   :  { %2149 = vmatmul.bf16.vlgmr.msra.gmra.mxu2 %v2139_v49 }
 0x3f0   :  { %v2150_v50 = vpop.f32.mrf.mxu2 }
 0x3f1   :  { %2155 = vst.msk [vmem:[#allocation19] sm:$0x1] %vm2154_vm7, %v2150_v50 }
 0x3f2   :  { %2166 = dma.vmem_to_hbm [thread:$0]  %s2162_s28, 16, %s2164_s15, [#allocation4]  }
 0x3f8   :  { %v2152_v51 = vpop.f32.mrf.mxu2 }
 0x3f9   :  { %3565 = dma.done.wait [#allocation4], 16  }
 0x3fa   :  { %3566 = vsyncadd [#allocation4], 4294967280 }
 0x3fb   :  { %2171 = vsyncpa [#allocation3], 1 }
 0x3fc   :  { %2172 = vsyncpa [#allocation6], 1 }
 0x3fd   :  { %2173 = vsyncpa [#allocation9], 1 }
 0x3fe   :  { %2174 = vsyncpa [#allocation12], 1 }
 0x3ff   :  { %2175 = vsyncpa [#allocation15], 1 }
 0x400   :  { %2176 = vsyncpa [#allocation18], 1 }
 0x401   :  { %2177 = vsyncpa [#allocation4], 1 }

</bundles_post_ra>
